<compile_context>
chip_gen: v7x
topology: tpu7x:2x2x1
jax: 0.10.0
libtpu: 0.0.40
codegen_flags: <defaults>
</compile_context>

<pallas_src>
import math

import jax
import jax.numpy as jnp
from jax.experimental import pallas as pl
from jax.experimental.pallas import tpu as pltpu

_LOG_2PI = math.log(2.0 * math.pi)


def _make_kernel(C, K, O, D):
    """Per-N-tile kernel with C/K/O statically unrolled; D on sublanes, N on lanes."""

    def kernel(zt_ref, mu_ref, c2_ref, w2_ref, lcw_ref, out_ref):
        zt = zt_ref[...]                                   # (D, NT), N lane-dense

        for c in range(C):
            # lp'[k] = -0.5 * ((z - mu)/std)^2 == diff^2 * c2   (log_std folded into c2 / w2).
            lps = []
            for k in range(K):
                diff = zt - mu_ref[c * K + k]              # (D, NT) - (D, 1)
                lps.append(diff * diff * c2_ref[c * K + k])

            # Stable shift: m = max_k lp'  (lp' <= 0, so exp(lp' - m) is in (0, 1]).
            m = lps[0]
            for k in range(1, K):
                m = jnp.maximum(m, lps[k])

            # exp evaluated only K*D*NT times per class (O factor handled by VPU mul-adds).
            elps = [jnp.exp(lp - m) for lp in lps]         # K x (D, NT)

            # Shared part of the D-sum (cheap sublane reduce in this layout), reused per o.
            msum = jnp.sum(m, axis=0, keepdims=True)       # (1, NT)

            s_rows = []
            for o in range(O):
                acc = elps[0] * w2_ref[(c * O + o) * K + 0]
                for k in range(1, K):
                    acc = acc + elps[k] * w2_ref[(c * O + o) * K + k]
                logacc = jnp.log(acc)                      # (D, NT)
                s = jnp.sum(logacc, axis=0, keepdims=True) + msum    # (1, NT)
                s_rows.append(s + lcw_ref[c, o])

            # logsumexp over O (+ fold the D * 0.5 * log(2*pi) constant here).
            m2 = s_rows[0]
            for o in range(1, O):
                m2 = jnp.maximum(m2, s_rows[o])
            se = jnp.exp(s_rows[0] - m2)
            for o in range(1, O):
                se = se + jnp.exp(s_rows[o] - m2)
            # Full-lane row store into the lane-dense (C, N) output.
            out_ref[c:c + 1, :] = jnp.log(se) + m2 - 0.5 * D * _LOG_2PI

    return kernel


def _pick_block_n(N):
    # Lane-dense tiles (multiples of 128) when the batch allows it; at least 2 grid steps so
    # both v7x TensorCores get work; cap 2048 amortizes the ~0.35us/step overhead while keeping
    # double-buffered tiles tiny vs VMEM on every generation.
    if N % 128 == 0 and N >= 256:
        return max(128, min(2048, (N // 2 // 128) * 128))
    return N   # small / ragged batch: one full-extent tile (always a legal block shape)


def per_class_hierarchical_forward(z, means, log_stds, weights_per_dim, class_weights,
                                   *, block_n=None):
    """Returns (z, lps) with lps of shape (N, n_classes), like the PyTorch module."""
    N, D = z.shape
    C, K, _ = means.shape
    O = weights_per_dim.shape[1]

    # Parameter-only precompute (independent of N), once in plain XLA:
    #   c2  = -0.5 * exp(-2*log_std)                        (curvature; log_std folded in)
    #   w2  = softmax_k(weights_per_dim) * exp(-log_std)    (linear-space weights; folded)
    #   lcw = log_softmax_o(class_weights)
    inv_std = jnp.exp(-log_stds)                                        # (C, K, D)
    c2 = -0.5 * inv_std * inv_std                                       # (C, K, D)
    w2 = jax.nn.softmax(weights_per_dim, axis=2) * inv_std[:, None]     # (C, O, K, D)
    lcw = jax.nn.log_softmax(class_weights[:, 0, :], axis=-1)           # (C, O)

    # Reshape so mu[ck] / c2[ck] / w2[cok] are natural (D, 1) columns in the transposed layout.
    mu_p = means.reshape(C * K, D)[..., None].astype(jnp.float32)       # (C*K, D, 1)
    c2_p = c2.reshape(C * K, D)[..., None].astype(jnp.float32)          # (C*K, D, 1)
    w2_p = w2.reshape(C * O * K, D)[..., None].astype(jnp.float32)      # (C*O*K, D, 1)
    zt = z.T.astype(jnp.float32)                                        # (D, N), N on lanes

    if block_n is None:
        block_n = _pick_block_n(N)
    grid_n = pl.cdiv(N, block_n)

    kernel = _make_kernel(C, K, O, D)

    # Advisory cost for the XLA scheduler.
    flops = N * C * D * (5 * K + 2 * O * K + 2 * O) + N * C * 6 * O
    transcendentals = N * C * (K * D + O * D + O + 1)
    bytes_accessed = 4 * (N * D + 2 * C * K * D + C * O * K * D + C * O + N * C)

    out_cn = pl.pallas_call(
        kernel,
        out_shape=jax.ShapeDtypeStruct((C, N), jnp.float32),
        grid=(grid_n,),
        in_specs=[
            pl.BlockSpec((D, block_n), lambda i: (0, i)),           # z^T tile (lane-dense N)
            pl.BlockSpec((C * K, D, 1), lambda i: (0, 0, 0)),       # means as (D,1) columns
            pl.BlockSpec((C * K, D, 1), lambda i: (0, 0, 0)),       # curvature c2
            pl.BlockSpec((C * O * K, D, 1), lambda i: (0, 0, 0)),   # folded softmax weights w2
            pl.BlockSpec(memory_space=pltpu.MemorySpace.SMEM),      # log class weights (tiny)
        ],
        out_specs=pl.BlockSpec((C, block_n), lambda i: (0, i)),     # lane-dense (C, N) output
        compiler_params=pltpu.CompilerParams(
            dimension_semantics=("parallel",)),
        cost_estimate=pl.CostEstimate(
            flops=flops, transcendentals=transcendentals, bytes_accessed=bytes_accessed),
    )(zt, mu_p, c2_p, w2_p, lcw)

    # Module semantics require (N, n_classes); (C, N) -> (N, C) is a tiny XLA transpose.
    return z, out_cn.T


def _reference_forward(z, means, log_stds, wdim, cw):
    """Pure-JAX reference of the same math (for correctness check)."""
    lp = (-0.5 * ((z[None, :, None, :] - means[:, None, :, :])
                  / jnp.exp(log_stds)[:, None, :, :]) ** 2
          - log_stds[:, None, :, :] - 0.5 * _LOG_2PI)                    # (C,N,K,D)
    lw = jax.nn.log_softmax(wdim, axis=2)                                # (C,O,K,D)
    wpm = lp[:, :, None, :, :] + lw[:, None, :, :, :]                    # (C,N,O,K,D)
    rpm = jax.scipy.special.logsumexp(wpm, axis=3)                       # (C,N,O,D)
    rpm_sum = jnp.sum(rpm, axis=-1)                                      # (C,N,O)
    lcw = jax.nn.log_softmax(cw, axis=-1)                                # (C,1,O)
    wpc = rpm_sum + lcw                                                  # (C,N,O)
    out = jax.scipy.special.logsumexp(wpc, axis=-1)                      # (C,N)
    return out.T                                                         # (N,C)


if __name__ == "__main__":
    # Small shapes consistent with the module's forward.
    n_dims = 32          # D
    n_classes = 4        # C
    n_overall_mixes = 2  # O
    n_dim_mixes = 3      # K
    init_weight_std, init_mean_std, init_std_std = 0.1, 0.1, 0.1

    key = jax.random.PRNGKey(0)
    km, ks, kw, kc, kz1, kz2 = jax.random.split(key, 6)

    # Deterministic "parameter" init mirroring __init__ shapes (one set per class).
    means = init_mean_std * jax.random.normal(
        km, (n_classes, n_dim_mixes, n_dims), dtype=jnp.float32)
    log_stds = init_std_std * jax.random.normal(
        ks, (n_classes, n_dim_mixes, n_dims), dtype=jnp.float32)
    weights_per_dim = init_weight_std * jax.random.normal(
        kw, (n_classes, n_overall_mixes, n_dim_mixes, n_dims), dtype=jnp.float32)
    class_weights = 0.1 * jax.random.normal(
        kc, (n_classes, 1, n_overall_mixes), dtype=jnp.float32)

    # Exercise both the tiny single-tile path (N=8) and the multi-tile lane-aligned path (N=256).
    for N, kz in ((8, kz1), (256, kz2)):
        z = jax.random.normal(kz, (N, n_dims), dtype=jnp.float32)
        _, lps = per_class_hierarchical_forward(
            z, means, log_stds, weights_per_dim, class_weights)
        lps = jax.block_until_ready(lps)
        ref = _reference_forward(z, means, log_stds, weights_per_dim, class_weights)
        assert lps.shape == (N, n_classes)
        assert jnp.allclose(lps, ref, rtol=1e-5, atol=2e-4), (
            f"N={N}: max abs err = {jnp.max(jnp.abs(lps - ref))}")

    print("KERNEL_OK")
</pallas_src>

<mosaic_0001>
module attributes {stable_mosaic.version = 11 : i64} {
  func.func @kernel(%arg0: i32, %arg1: memref<32x8xf32, #tpu.memory_space<vmem>>, %arg2: memref<12x32x1xf32, #tpu.memory_space<vmem>>, %arg3: memref<12x32x1xf32, #tpu.memory_space<vmem>>, %arg4: memref<24x32x1xf32, #tpu.memory_space<vmem>>, %arg5: memref<4x2xf32, #tpu.memory_space<smem>>, %arg6: memref<4x8xf32, #tpu.memory_space<vmem>>) attributes {dimension_semantics = [#tpu.dimension_semantics<parallel>], iteration_bounds = array<i64: 1>, scalar_prefetch = 0 : i64, scratch_operands = 0 : i64, tpu.core_type = #tpu.core_type<tc>, window_params = [{transform_indices = @transform_0, window_bounds = array<i64: 32, 8>}, {pipeline_mode = #tpu.pipeline_mode<synchronous>, transform_indices = @transform_1, window_bounds = array<i64: 12, 32, 1>}, {pipeline_mode = #tpu.pipeline_mode<synchronous>, transform_indices = @transform_2, window_bounds = array<i64: 12, 32, 1>}, {pipeline_mode = #tpu.pipeline_mode<synchronous>, transform_indices = @transform_3, window_bounds = array<i64: 24, 32, 1>}, {transform_indices = @transform_4, window_bounds = array<i64: 4, 2>}, {transform_indices = @transform_5, window_bounds = array<i64: 4, 8>}]} {
    %c0 = arith.constant 0 : index
    %c0_0 = arith.constant 0 : index
    %0 = vector.load %arg1[%c0, %c0_0] : memref<32x8xf32, #tpu.memory_space<vmem>>, vector<32x8xf32>
    %c0_1 = arith.constant 0 : index
    %c0_2 = arith.constant 0 : index
    %c0_3 = arith.constant 0 : index
    %1 = vector.load %arg2[%c0_1, %c0_2, %c0_3] : memref<12x32x1xf32, #tpu.memory_space<vmem>>, vector<1x32x1xf32>
    %2 = vector.shape_cast %1 : vector<1x32x1xf32> to vector<32x1xf32>
    %3 = vector.broadcast %2 : vector<32x1xf32> to vector<32x8xf32>
    %4 = arith.subf %0, %3 : vector<32x8xf32>
    %5 = arith.mulf %4, %4 : vector<32x8xf32>
    %c0_4 = arith.constant 0 : index
    %c0_5 = arith.constant 0 : index
    %c0_6 = arith.constant 0 : index
    %6 = vector.load %arg3[%c0_4, %c0_5, %c0_6] : memref<12x32x1xf32, #tpu.memory_space<vmem>>, vector<1x32x1xf32>
    %7 = vector.shape_cast %6 : vector<1x32x1xf32> to vector<32x1xf32>
    %8 = vector.broadcast %7 : vector<32x1xf32> to vector<32x8xf32>
    %9 = arith.mulf %5, %8 : vector<32x8xf32>
    %c1 = arith.constant 1 : index
    %c0_7 = arith.constant 0 : index
    %c0_8 = arith.constant 0 : index
    %10 = vector.load %arg2[%c1, %c0_7, %c0_8] : memref<12x32x1xf32, #tpu.memory_space<vmem>>, vector<1x32x1xf32>
    %11 = vector.shape_cast %10 : vector<1x32x1xf32> to vector<32x1xf32>
    %12 = vector.broadcast %11 : vector<32x1xf32> to vector<32x8xf32>
    %13 = arith.subf %0, %12 : vector<32x8xf32>
    %14 = arith.mulf %13, %13 : vector<32x8xf32>
    %c1_9 = arith.constant 1 : index
    %c0_10 = arith.constant 0 : index
    %c0_11 = arith.constant 0 : index
    %15 = vector.load %arg3[%c1_9, %c0_10, %c0_11] : memref<12x32x1xf32, #tpu.memory_space<vmem>>, vector<1x32x1xf32>
    %16 = vector.shape_cast %15 : vector<1x32x1xf32> to vector<32x1xf32>
    %17 = vector.broadcast %16 : vector<32x1xf32> to vector<32x8xf32>
    %18 = arith.mulf %14, %17 : vector<32x8xf32>
    %c2 = arith.constant 2 : index
    %c0_12 = arith.constant 0 : index
    %c0_13 = arith.constant 0 : index
    %19 = vector.load %arg2[%c2, %c0_12, %c0_13] : memref<12x32x1xf32, #tpu.memory_space<vmem>>, vector<1x32x1xf32>
    %20 = vector.shape_cast %19 : vector<1x32x1xf32> to vector<32x1xf32>
    %21 = vector.broadcast %20 : vector<32x1xf32> to vector<32x8xf32>
    %22 = arith.subf %0, %21 : vector<32x8xf32>
    %23 = arith.mulf %22, %22 : vector<32x8xf32>
    %c2_14 = arith.constant 2 : index
    %c0_15 = arith.constant 0 : index
    %c0_16 = arith.constant 0 : index
    %24 = vector.load %arg3[%c2_14, %c0_15, %c0_16] : memref<12x32x1xf32, #tpu.memory_space<vmem>>, vector<1x32x1xf32>
    %25 = vector.shape_cast %24 : vector<1x32x1xf32> to vector<32x1xf32>
    %26 = vector.broadcast %25 : vector<32x1xf32> to vector<32x8xf32>
    %27 = arith.mulf %23, %26 : vector<32x8xf32>
    %28 = arith.maximumf %9, %18 : vector<32x8xf32>
    %29 = arith.maximumf %28, %27 : vector<32x8xf32>
    %30 = arith.subf %9, %29 : vector<32x8xf32>
    %31 = math.exp %30 : vector<32x8xf32>
    %32 = arith.subf %18, %29 : vector<32x8xf32>
    %33 = math.exp %32 : vector<32x8xf32>
    %34 = arith.subf %27, %29 : vector<32x8xf32>
    %35 = math.exp %34 : vector<32x8xf32>
    %cst = arith.constant dense<0.000000e+00> : vector<8xf32>
    %36 = vector.multi_reduction <add>, %29, %cst [0] : vector<32x8xf32> to vector<8xf32>
    %37 = vector.shape_cast %36 : vector<8xf32> to vector<1x8xf32>
    %c0_17 = arith.constant 0 : index
    %c0_18 = arith.constant 0 : index
    %c0_19 = arith.constant 0 : index
    %38 = vector.load %arg4[%c0_17, %c0_18, %c0_19] : memref<24x32x1xf32, #tpu.memory_space<vmem>>, vector<1x32x1xf32>
    %39 = vector.shape_cast %38 : vector<1x32x1xf32> to vector<32x1xf32>
    %40 = vector.broadcast %39 : vector<32x1xf32> to vector<32x8xf32>
    %41 = arith.mulf %31, %40 : vector<32x8xf32>
    %c1_20 = arith.constant 1 : index
    %c0_21 = arith.constant 0 : index
    %c0_22 = arith.constant 0 : index
    %42 = vector.load %arg4[%c1_20, %c0_21, %c0_22] : memref<24x32x1xf32, #tpu.memory_space<vmem>>, vector<1x32x1xf32>
    %43 = vector.shape_cast %42 : vector<1x32x1xf32> to vector<32x1xf32>
    %44 = vector.broadcast %43 : vector<32x1xf32> to vector<32x8xf32>
    %45 = arith.mulf %33, %44 : vector<32x8xf32>
    %46 = arith.addf %41, %45 : vector<32x8xf32>
    %c2_23 = arith.constant 2 : index
    %c0_24 = arith.constant 0 : index
    %c0_25 = arith.constant 0 : index
    %47 = vector.load %arg4[%c2_23, %c0_24, %c0_25] : memref<24x32x1xf32, #tpu.memory_space<vmem>>, vector<1x32x1xf32>
    %48 = vector.shape_cast %47 : vector<1x32x1xf32> to vector<32x1xf32>
    %49 = vector.broadcast %48 : vector<32x1xf32> to vector<32x8xf32>
    %50 = arith.mulf %35, %49 : vector<32x8xf32>
    %51 = arith.addf %46, %50 : vector<32x8xf32>
    %52 = math.log %51 : vector<32x8xf32>
    %cst_26 = arith.constant dense<0.000000e+00> : vector<8xf32>
    %53 = vector.multi_reduction <add>, %52, %cst_26 [0] : vector<32x8xf32> to vector<8xf32>
    %54 = vector.shape_cast %53 : vector<8xf32> to vector<1x8xf32>
    %55 = arith.addf %54, %37 : vector<1x8xf32>
    %c0_27 = arith.constant 0 : index
    %c0_28 = arith.constant 0 : index
    %56 = memref.load %arg5[%c0_27, %c0_28] : memref<4x2xf32, #tpu.memory_space<smem>>
    %57 = vector.broadcast %56 : f32 to vector<1x8xf32>
    %58 = arith.addf %55, %57 : vector<1x8xf32>
    %c3 = arith.constant 3 : index
    %c0_29 = arith.constant 0 : index
    %c0_30 = arith.constant 0 : index
    %59 = vector.load %arg4[%c3, %c0_29, %c0_30] : memref<24x32x1xf32, #tpu.memory_space<vmem>>, vector<1x32x1xf32>
    %60 = vector.shape_cast %59 : vector<1x32x1xf32> to vector<32x1xf32>
    %61 = vector.broadcast %60 : vector<32x1xf32> to vector<32x8xf32>
    %62 = arith.mulf %31, %61 : vector<32x8xf32>
    %c4 = arith.constant 4 : index
    %c0_31 = arith.constant 0 : index
    %c0_32 = arith.constant 0 : index
    %63 = vector.load %arg4[%c4, %c0_31, %c0_32] : memref<24x32x1xf32, #tpu.memory_space<vmem>>, vector<1x32x1xf32>
    %64 = vector.shape_cast %63 : vector<1x32x1xf32> to vector<32x1xf32>
    %65 = vector.broadcast %64 : vector<32x1xf32> to vector<32x8xf32>
    %66 = arith.mulf %33, %65 : vector<32x8xf32>
    %67 = arith.addf %62, %66 : vector<32x8xf32>
    %c5 = arith.constant 5 : index
    %c0_33 = arith.constant 0 : index
    %c0_34 = arith.constant 0 : index
    %68 = vector.load %arg4[%c5, %c0_33, %c0_34] : memref<24x32x1xf32, #tpu.memory_space<vmem>>, vector<1x32x1xf32>
    %69 = vector.shape_cast %68 : vector<1x32x1xf32> to vector<32x1xf32>
    %70 = vector.broadcast %69 : vector<32x1xf32> to vector<32x8xf32>
    %71 = arith.mulf %35, %70 : vector<32x8xf32>
    %72 = arith.addf %67, %71 : vector<32x8xf32>
    %73 = math.log %72 : vector<32x8xf32>
    %cst_35 = arith.constant dense<0.000000e+00> : vector<8xf32>
    %74 = vector.multi_reduction <add>, %73, %cst_35 [0] : vector<32x8xf32> to vector<8xf32>
    %75 = vector.shape_cast %74 : vector<8xf32> to vector<1x8xf32>
    %76 = arith.addf %75, %37 : vector<1x8xf32>
    %c0_36 = arith.constant 0 : index
    %c1_37 = arith.constant 1 : index
    %77 = memref.load %arg5[%c0_36, %c1_37] : memref<4x2xf32, #tpu.memory_space<smem>>
    %78 = vector.broadcast %77 : f32 to vector<1x8xf32>
    %79 = arith.addf %76, %78 : vector<1x8xf32>
    %80 = arith.maximumf %58, %79 : vector<1x8xf32>
    %81 = arith.subf %58, %80 : vector<1x8xf32>
    %82 = math.exp %81 : vector<1x8xf32>
    %83 = arith.subf %79, %80 : vector<1x8xf32>
    %84 = math.exp %83 : vector<1x8xf32>
    %85 = arith.addf %82, %84 : vector<1x8xf32>
    %86 = math.log %85 : vector<1x8xf32>
    %87 = arith.addf %86, %80 : vector<1x8xf32>
    %cst_38 = arith.constant 29.4060326 : f32
    %88 = vector.broadcast %cst_38 : f32 to vector<1x8xf32>
    %89 = arith.subf %87, %88 : vector<1x8xf32>
    %c0_39 = arith.constant 0 : index
    %c0_40 = arith.constant 0 : index
    %90 = vector.load %arg6[%c0_39, %c0_40] : memref<4x8xf32, #tpu.memory_space<vmem>>, vector<1x8xf32>
    tpu.vector_store %arg6[%c0_39, %c0_40], %89 {strides = array<i32>} : memref<4x8xf32, #tpu.memory_space<vmem>>, vector<1x8xf32>,
    %c3_41 = arith.constant 3 : index
    %c0_42 = arith.constant 0 : index
    %c0_43 = arith.constant 0 : index
    %91 = vector.load %arg2[%c3_41, %c0_42, %c0_43] : memref<12x32x1xf32, #tpu.memory_space<vmem>>, vector<1x32x1xf32>
    %92 = vector.shape_cast %91 : vector<1x32x1xf32> to vector<32x1xf32>
    %93 = vector.broadcast %92 : vector<32x1xf32> to vector<32x8xf32>
    %94 = arith.subf %0, %93 : vector<32x8xf32>
    %95 = arith.mulf %94, %94 : vector<32x8xf32>
    %c3_44 = arith.constant 3 : index
    %c0_45 = arith.constant 0 : index
    %c0_46 = arith.constant 0 : index
    %96 = vector.load %arg3[%c3_44, %c0_45, %c0_46] : memref<12x32x1xf32, #tpu.memory_space<vmem>>, vector<1x32x1xf32>
    %97 = vector.shape_cast %96 : vector<1x32x1xf32> to vector<32x1xf32>
    %98 = vector.broadcast %97 : vector<32x1xf32> to vector<32x8xf32>
    %99 = arith.mulf %95, %98 : vector<32x8xf32>
    %c4_47 = arith.constant 4 : index
    %c0_48 = arith.constant 0 : index
    %c0_49 = arith.constant 0 : index
    %100 = vector.load %arg2[%c4_47, %c0_48, %c0_49] : memref<12x32x1xf32, #tpu.memory_space<vmem>>, vector<1x32x1xf32>
    %101 = vector.shape_cast %100 : vector<1x32x1xf32> to vector<32x1xf32>
    %102 = vector.broadcast %101 : vector<32x1xf32> to vector<32x8xf32>
    %103 = arith.subf %0, %102 : vector<32x8xf32>
    %104 = arith.mulf %103, %103 : vector<32x8xf32>
    %c4_50 = arith.constant 4 : index
    %c0_51 = arith.constant 0 : index
    %c0_52 = arith.constant 0 : index
    %105 = vector.load %arg3[%c4_50, %c0_51, %c0_52] : memref<12x32x1xf32, #tpu.memory_space<vmem>>, vector<1x32x1xf32>
    %106 = vector.shape_cast %105 : vector<1x32x1xf32> to vector<32x1xf32>
    %107 = vector.broadcast %106 : vector<32x1xf32> to vector<32x8xf32>
    %108 = arith.mulf %104, %107 : vector<32x8xf32>
    %c5_53 = arith.constant 5 : index
    %c0_54 = arith.constant 0 : index
    %c0_55 = arith.constant 0 : index
    %109 = vector.load %arg2[%c5_53, %c0_54, %c0_55] : memref<12x32x1xf32, #tpu.memory_space<vmem>>, vector<1x32x1xf32>
    %110 = vector.shape_cast %109 : vector<1x32x1xf32> to vector<32x1xf32>
    %111 = vector.broadcast %110 : vector<32x1xf32> to vector<32x8xf32>
    %112 = arith.subf %0, %111 : vector<32x8xf32>
    %113 = arith.mulf %112, %112 : vector<32x8xf32>
    %c5_56 = arith.constant 5 : index
    %c0_57 = arith.constant 0 : index
    %c0_58 = arith.constant 0 : index
    %114 = vector.load %arg3[%c5_56, %c0_57, %c0_58] : memref<12x32x1xf32, #tpu.memory_space<vmem>>, vector<1x32x1xf32>
    %115 = vector.shape_cast %114 : vector<1x32x1xf32> to vector<32x1xf32>
    %116 = vector.broadcast %115 : vector<32x1xf32> to vector<32x8xf32>
    %117 = arith.mulf %113, %116 : vector<32x8xf32>
    %118 = arith.maximumf %99, %108 : vector<32x8xf32>
    %119 = arith.maximumf %118, %117 : vector<32x8xf32>
    %120 = arith.subf %99, %119 : vector<32x8xf32>
    %121 = math.exp %120 : vector<32x8xf32>
    %122 = arith.subf %108, %119 : vector<32x8xf32>
    %123 = math.exp %122 : vector<32x8xf32>
    %124 = arith.subf %117, %119 : vector<32x8xf32>
    %125 = math.exp %124 : vector<32x8xf32>
    %cst_59 = arith.constant dense<0.000000e+00> : vector<8xf32>
    %126 = vector.multi_reduction <add>, %119, %cst_59 [0] : vector<32x8xf32> to vector<8xf32>
    %127 = vector.shape_cast %126 : vector<8xf32> to vector<1x8xf32>
    %c6 = arith.constant 6 : index
    %c0_60 = arith.constant 0 : index
    %c0_61 = arith.constant 0 : index
    %128 = vector.load %arg4[%c6, %c0_60, %c0_61] : memref<24x32x1xf32, #tpu.memory_space<vmem>>, vector<1x32x1xf32>
    %129 = vector.shape_cast %128 : vector<1x32x1xf32> to vector<32x1xf32>
    %130 = vector.broadcast %129 : vector<32x1xf32> to vector<32x8xf32>
    %131 = arith.mulf %121, %130 : vector<32x8xf32>
    %c7 = arith.constant 7 : index
    %c0_62 = arith.constant 0 : index
    %c0_63 = arith.constant 0 : index
    %132 = vector.load %arg4[%c7, %c0_62, %c0_63] : memref<24x32x1xf32, #tpu.memory_space<vmem>>, vector<1x32x1xf32>
    %133 = vector.shape_cast %132 : vector<1x32x1xf32> to vector<32x1xf32>
    %134 = vector.broadcast %133 : vector<32x1xf32> to vector<32x8xf32>
    %135 = arith.mulf %123, %134 : vector<32x8xf32>
    %136 = arith.addf %131, %135 : vector<32x8xf32>
    %c8 = arith.constant 8 : index
    %c0_64 = arith.constant 0 : index
    %c0_65 = arith.constant 0 : index
    %137 = vector.load %arg4[%c8, %c0_64, %c0_65] : memref<24x32x1xf32, #tpu.memory_space<vmem>>, vector<1x32x1xf32>
    %138 = vector.shape_cast %137 : vector<1x32x1xf32> to vector<32x1xf32>
    %139 = vector.broadcast %138 : vector<32x1xf32> to vector<32x8xf32>
    %140 = arith.mulf %125, %139 : vector<32x8xf32>
    %141 = arith.addf %136, %140 : vector<32x8xf32>
    %142 = math.log %141 : vector<32x8xf32>
    %cst_66 = arith.constant dense<0.000000e+00> : vector<8xf32>
    %143 = vector.multi_reduction <add>, %142, %cst_66 [0] : vector<32x8xf32> to vector<8xf32>
    %144 = vector.shape_cast %143 : vector<8xf32> to vector<1x8xf32>
    %145 = arith.addf %144, %127 : vector<1x8xf32>
    %c1_67 = arith.constant 1 : index
    %c0_68 = arith.constant 0 : index
    %146 = memref.load %arg5[%c1_67, %c0_68] : memref<4x2xf32, #tpu.memory_space<smem>>
    %147 = vector.broadcast %146 : f32 to vector<1x8xf32>
    %148 = arith.addf %145, %147 : vector<1x8xf32>
    %c9 = arith.constant 9 : index
    %c0_69 = arith.constant 0 : index
    %c0_70 = arith.constant 0 : index
    %149 = vector.load %arg4[%c9, %c0_69, %c0_70] : memref<24x32x1xf32, #tpu.memory_space<vmem>>, vector<1x32x1xf32>
    %150 = vector.shape_cast %149 : vector<1x32x1xf32> to vector<32x1xf32>
    %151 = vector.broadcast %150 : vector<32x1xf32> to vector<32x8xf32>
    %152 = arith.mulf %121, %151 : vector<32x8xf32>
    %c10 = arith.constant 10 : index
    %c0_71 = arith.constant 0 : index
    %c0_72 = arith.constant 0 : index
    %153 = vector.load %arg4[%c10, %c0_71, %c0_72] : memref<24x32x1xf32, #tpu.memory_space<vmem>>, vector<1x32x1xf32>
    %154 = vector.shape_cast %153 : vector<1x32x1xf32> to vector<32x1xf32>
    %155 = vector.broadcast %154 : vector<32x1xf32> to vector<32x8xf32>
    %156 = arith.mulf %123, %155 : vector<32x8xf32>
    %157 = arith.addf %152, %156 : vector<32x8xf32>
    %c11 = arith.constant 11 : index
    %c0_73 = arith.constant 0 : index
    %c0_74 = arith.constant 0 : index
    %158 = vector.load %arg4[%c11, %c0_73, %c0_74] : memref<24x32x1xf32, #tpu.memory_space<vmem>>, vector<1x32x1xf32>
    %159 = vector.shape_cast %158 : vector<1x32x1xf32> to vector<32x1xf32>
    %160 = vector.broadcast %159 : vector<32x1xf32> to vector<32x8xf32>
    %161 = arith.mulf %125, %160 : vector<32x8xf32>
    %162 = arith.addf %157, %161 : vector<32x8xf32>
    %163 = math.log %162 : vector<32x8xf32>
    %cst_75 = arith.constant dense<0.000000e+00> : vector<8xf32>
    %164 = vector.multi_reduction <add>, %163, %cst_75 [0] : vector<32x8xf32> to vector<8xf32>
    %165 = vector.shape_cast %164 : vector<8xf32> to vector<1x8xf32>
    %166 = arith.addf %165, %127 : vector<1x8xf32>
    %c1_76 = arith.constant 1 : index
    %c1_77 = arith.constant 1 : index
    %167 = memref.load %arg5[%c1_76, %c1_77] : memref<4x2xf32, #tpu.memory_space<smem>>
    %168 = vector.broadcast %167 : f32 to vector<1x8xf32>
    %169 = arith.addf %166, %168 : vector<1x8xf32>
    %170 = arith.maximumf %148, %169 : vector<1x8xf32>
    %171 = arith.subf %148, %170 : vector<1x8xf32>
    %172 = math.exp %171 : vector<1x8xf32>
    %173 = arith.subf %169, %170 : vector<1x8xf32>
    %174 = math.exp %173 : vector<1x8xf32>
    %175 = arith.addf %172, %174 : vector<1x8xf32>
    %176 = math.log %175 : vector<1x8xf32>
    %177 = arith.addf %176, %170 : vector<1x8xf32>
    %cst_78 = arith.constant 29.4060326 : f32
    %178 = vector.broadcast %cst_78 : f32 to vector<1x8xf32>
    %179 = arith.subf %177, %178 : vector<1x8xf32>
    %c1_79 = arith.constant 1 : index
    %c0_80 = arith.constant 0 : index
    %180 = vector.load %arg6[%c1_79, %c0_80] : memref<4x8xf32, #tpu.memory_space<vmem>>, vector<1x8xf32>
    tpu.vector_store %arg6[%c1_79, %c0_80], %179 {strides = array<i32>} : memref<4x8xf32, #tpu.memory_space<vmem>>, vector<1x8xf32>,
    %c6_81 = arith.constant 6 : index
    %c0_82 = arith.constant 0 : index
    %c0_83 = arith.constant 0 : index
    %181 = vector.load %arg2[%c6_81, %c0_82, %c0_83] : memref<12x32x1xf32, #tpu.memory_space<vmem>>, vector<1x32x1xf32>
    %182 = vector.shape_cast %181 : vector<1x32x1xf32> to vector<32x1xf32>
    %183 = vector.broadcast %182 : vector<32x1xf32> to vector<32x8xf32>
    %184 = arith.subf %0, %183 : vector<32x8xf32>
    %185 = arith.mulf %184, %184 : vector<32x8xf32>
    %c6_84 = arith.constant 6 : index
    %c0_85 = arith.constant 0 : index
    %c0_86 = arith.constant 0 : index
    %186 = vector.load %arg3[%c6_84, %c0_85, %c0_86] : memref<12x32x1xf32, #tpu.memory_space<vmem>>, vector<1x32x1xf32>
    %187 = vector.shape_cast %186 : vector<1x32x1xf32> to vector<32x1xf32>
    %188 = vector.broadcast %187 : vector<32x1xf32> to vector<32x8xf32>
    %189 = arith.mulf %185, %188 : vector<32x8xf32>
    %c7_87 = arith.constant 7 : index
    %c0_88 = arith.constant 0 : index
    %c0_89 = arith.constant 0 : index
    %190 = vector.load %arg2[%c7_87, %c0_88, %c0_89] : memref<12x32x1xf32, #tpu.memory_space<vmem>>, vector<1x32x1xf32>
    %191 = vector.shape_cast %190 : vector<1x32x1xf32> to vector<32x1xf32>
    %192 = vector.broadcast %191 : vector<32x1xf32> to vector<32x8xf32>
    %193 = arith.subf %0, %192 : vector<32x8xf32>
    %194 = arith.mulf %193, %193 : vector<32x8xf32>
    %c7_90 = arith.constant 7 : index
    %c0_91 = arith.constant 0 : index
    %c0_92 = arith.constant 0 : index
    %195 = vector.load %arg3[%c7_90, %c0_91, %c0_92] : memref<12x32x1xf32, #tpu.memory_space<vmem>>, vector<1x32x1xf32>
    %196 = vector.shape_cast %195 : vector<1x32x1xf32> to vector<32x1xf32>
    %197 = vector.broadcast %196 : vector<32x1xf32> to vector<32x8xf32>
    %198 = arith.mulf %194, %197 : vector<32x8xf32>
    %c8_93 = arith.constant 8 : index
    %c0_94 = arith.constant 0 : index
    %c0_95 = arith.constant 0 : index
    %199 = vector.load %arg2[%c8_93, %c0_94, %c0_95] : memref<12x32x1xf32, #tpu.memory_space<vmem>>, vector<1x32x1xf32>
    %200 = vector.shape_cast %199 : vector<1x32x1xf32> to vector<32x1xf32>
    %201 = vector.broadcast %200 : vector<32x1xf32> to vector<32x8xf32>
    %202 = arith.subf %0, %201 : vector<32x8xf32>
    %203 = arith.mulf %202, %202 : vector<32x8xf32>
    %c8_96 = arith.constant 8 : index
    %c0_97 = arith.constant 0 : index
    %c0_98 = arith.constant 0 : index
    %204 = vector.load %arg3[%c8_96, %c0_97, %c0_98] : memref<12x32x1xf32, #tpu.memory_space<vmem>>, vector<1x32x1xf32>
    %205 = vector.shape_cast %204 : vector<1x32x1xf32> to vector<32x1xf32>
    %206 = vector.broadcast %205 : vector<32x1xf32> to vector<32x8xf32>
    %207 = arith.mulf %203, %206 : vector<32x8xf32>
    %208 = arith.maximumf %189, %198 : vector<32x8xf32>
    %209 = arith.maximumf %208, %207 : vector<32x8xf32>
    %210 = arith.subf %189, %209 : vector<32x8xf32>
    %211 = math.exp %210 : vector<32x8xf32>
    %212 = arith.subf %198, %209 : vector<32x8xf32>
    %213 = math.exp %212 : vector<32x8xf32>
    %214 = arith.subf %207, %209 : vector<32x8xf32>
    %215 = math.exp %214 : vector<32x8xf32>
    %cst_99 = arith.constant dense<0.000000e+00> : vector<8xf32>
    %216 = vector.multi_reduction <add>, %209, %cst_99 [0] : vector<32x8xf32> to vector<8xf32>
    %217 = vector.shape_cast %216 : vector<8xf32> to vector<1x8xf32>
    %c12 = arith.constant 12 : index
    %c0_100 = arith.constant 0 : index
    %c0_101 = arith.constant 0 : index
    %218 = vector.load %arg4[%c12, %c0_100, %c0_101] : memref<24x32x1xf32, #tpu.memory_space<vmem>>, vector<1x32x1xf32>
    %219 = vector.shape_cast %218 : vector<1x32x1xf32> to vector<32x1xf32>
    %220 = vector.broadcast %219 : vector<32x1xf32> to vector<32x8xf32>
    %221 = arith.mulf %211, %220 : vector<32x8xf32>
    %c13 = arith.constant 13 : index
    %c0_102 = arith.constant 0 : index
    %c0_103 = arith.constant 0 : index
    %222 = vector.load %arg4[%c13, %c0_102, %c0_103] : memref<24x32x1xf32, #tpu.memory_space<vmem>>, vector<1x32x1xf32>
    %223 = vector.shape_cast %222 : vector<1x32x1xf32> to vector<32x1xf32>
    %224 = vector.broadcast %223 : vector<32x1xf32> to vector<32x8xf32>
    %225 = arith.mulf %213, %224 : vector<32x8xf32>
    %226 = arith.addf %221, %225 : vector<32x8xf32>
    %c14 = arith.constant 14 : index
    %c0_104 = arith.constant 0 : index
    %c0_105 = arith.constant 0 : index
    %227 = vector.load %arg4[%c14, %c0_104, %c0_105] : memref<24x32x1xf32, #tpu.memory_space<vmem>>, vector<1x32x1xf32>
    %228 = vector.shape_cast %227 : vector<1x32x1xf32> to vector<32x1xf32>
    %229 = vector.broadcast %228 : vector<32x1xf32> to vector<32x8xf32>
    %230 = arith.mulf %215, %229 : vector<32x8xf32>
    %231 = arith.addf %226, %230 : vector<32x8xf32>
    %232 = math.log %231 : vector<32x8xf32>
    %cst_106 = arith.constant dense<0.000000e+00> : vector<8xf32>
    %233 = vector.multi_reduction <add>, %232, %cst_106 [0] : vector<32x8xf32> to vector<8xf32>
    %234 = vector.shape_cast %233 : vector<8xf32> to vector<1x8xf32>
    %235 = arith.addf %234, %217 : vector<1x8xf32>
    %c2_107 = arith.constant 2 : index
    %c0_108 = arith.constant 0 : index
    %236 = memref.load %arg5[%c2_107, %c0_108] : memref<4x2xf32, #tpu.memory_space<smem>>
    %237 = vector.broadcast %236 : f32 to vector<1x8xf32>
    %238 = arith.addf %235, %237 : vector<1x8xf32>
    %c15 = arith.constant 15 : index
    %c0_109 = arith.constant 0 : index
    %c0_110 = arith.constant 0 : index
    %239 = vector.load %arg4[%c15, %c0_109, %c0_110] : memref<24x32x1xf32, #tpu.memory_space<vmem>>, vector<1x32x1xf32>
    %240 = vector.shape_cast %239 : vector<1x32x1xf32> to vector<32x1xf32>
    %241 = vector.broadcast %240 : vector<32x1xf32> to vector<32x8xf32>
    %242 = arith.mulf %211, %241 : vector<32x8xf32>
    %c16 = arith.constant 16 : index
    %c0_111 = arith.constant 0 : index
    %c0_112 = arith.constant 0 : index
    %243 = vector.load %arg4[%c16, %c0_111, %c0_112] : memref<24x32x1xf32, #tpu.memory_space<vmem>>, vector<1x32x1xf32>
    %244 = vector.shape_cast %243 : vector<1x32x1xf32> to vector<32x1xf32>
    %245 = vector.broadcast %244 : vector<32x1xf32> to vector<32x8xf32>
    %246 = arith.mulf %213, %245 : vector<32x8xf32>
    %247 = arith.addf %242, %246 : vector<32x8xf32>
    %c17 = arith.constant 17 : index
    %c0_113 = arith.constant 0 : index
    %c0_114 = arith.constant 0 : index
    %248 = vector.load %arg4[%c17, %c0_113, %c0_114] : memref<24x32x1xf32, #tpu.memory_space<vmem>>, vector<1x32x1xf32>
    %249 = vector.shape_cast %248 : vector<1x32x1xf32> to vector<32x1xf32>
    %250 = vector.broadcast %249 : vector<32x1xf32> to vector<32x8xf32>
    %251 = arith.mulf %215, %250 : vector<32x8xf32>
    %252 = arith.addf %247, %251 : vector<32x8xf32>
    %253 = math.log %252 : vector<32x8xf32>
    %cst_115 = arith.constant dense<0.000000e+00> : vector<8xf32>
    %254 = vector.multi_reduction <add>, %253, %cst_115 [0] : vector<32x8xf32> to vector<8xf32>
    %255 = vector.shape_cast %254 : vector<8xf32> to vector<1x8xf32>
    %256 = arith.addf %255, %217 : vector<1x8xf32>
    %c2_116 = arith.constant 2 : index
    %c1_117 = arith.constant 1 : index
    %257 = memref.load %arg5[%c2_116, %c1_117] : memref<4x2xf32, #tpu.memory_space<smem>>
    %258 = vector.broadcast %257 : f32 to vector<1x8xf32>
    %259 = arith.addf %256, %258 : vector<1x8xf32>
    %260 = arith.maximumf %238, %259 : vector<1x8xf32>
    %261 = arith.subf %238, %260 : vector<1x8xf32>
    %262 = math.exp %261 : vector<1x8xf32>
    %263 = arith.subf %259, %260 : vector<1x8xf32>
    %264 = math.exp %263 : vector<1x8xf32>
    %265 = arith.addf %262, %264 : vector<1x8xf32>
    %266 = math.log %265 : vector<1x8xf32>
    %267 = arith.addf %266, %260 : vector<1x8xf32>
    %cst_118 = arith.constant 29.4060326 : f32
    %268 = vector.broadcast %cst_118 : f32 to vector<1x8xf32>
    %269 = arith.subf %267, %268 : vector<1x8xf32>
    %c2_119 = arith.constant 2 : index
    %c0_120 = arith.constant 0 : index
    %270 = vector.load %arg6[%c2_119, %c0_120] : memref<4x8xf32, #tpu.memory_space<vmem>>, vector<1x8xf32>
    tpu.vector_store %arg6[%c2_119, %c0_120], %269 {strides = array<i32>} : memref<4x8xf32, #tpu.memory_space<vmem>>, vector<1x8xf32>,
    %c9_121 = arith.constant 9 : index
    %c0_122 = arith.constant 0 : index
    %c0_123 = arith.constant 0 : index
    %271 = vector.load %arg2[%c9_121, %c0_122, %c0_123] : memref<12x32x1xf32, #tpu.memory_space<vmem>>, vector<1x32x1xf32>
    %272 = vector.shape_cast %271 : vector<1x32x1xf32> to vector<32x1xf32>
    %273 = vector.broadcast %272 : vector<32x1xf32> to vector<32x8xf32>
    %274 = arith.subf %0, %273 : vector<32x8xf32>
    %275 = arith.mulf %274, %274 : vector<32x8xf32>
    %c9_124 = arith.constant 9 : index
    %c0_125 = arith.constant 0 : index
    %c0_126 = arith.constant 0 : index
    %276 = vector.load %arg3[%c9_124, %c0_125, %c0_126] : memref<12x32x1xf32, #tpu.memory_space<vmem>>, vector<1x32x1xf32>
    %277 = vector.shape_cast %276 : vector<1x32x1xf32> to vector<32x1xf32>
    %278 = vector.broadcast %277 : vector<32x1xf32> to vector<32x8xf32>
    %279 = arith.mulf %275, %278 : vector<32x8xf32>
    %c10_127 = arith.constant 10 : index
    %c0_128 = arith.constant 0 : index
    %c0_129 = arith.constant 0 : index
    %280 = vector.load %arg2[%c10_127, %c0_128, %c0_129] : memref<12x32x1xf32, #tpu.memory_space<vmem>>, vector<1x32x1xf32>
    %281 = vector.shape_cast %280 : vector<1x32x1xf32> to vector<32x1xf32>
    %282 = vector.broadcast %281 : vector<32x1xf32> to vector<32x8xf32>
    %283 = arith.subf %0, %282 : vector<32x8xf32>
    %284 = arith.mulf %283, %283 : vector<32x8xf32>
    %c10_130 = arith.constant 10 : index
    %c0_131 = arith.constant 0 : index
    %c0_132 = arith.constant 0 : index
    %285 = vector.load %arg3[%c10_130, %c0_131, %c0_132] : memref<12x32x1xf32, #tpu.memory_space<vmem>>, vector<1x32x1xf32>
    %286 = vector.shape_cast %285 : vector<1x32x1xf32> to vector<32x1xf32>
    %287 = vector.broadcast %286 : vector<32x1xf32> to vector<32x8xf32>
    %288 = arith.mulf %284, %287 : vector<32x8xf32>
    %c11_133 = arith.constant 11 : index
    %c0_134 = arith.constant 0 : index
    %c0_135 = arith.constant 0 : index
    %289 = vector.load %arg2[%c11_133, %c0_134, %c0_135] : memref<12x32x1xf32, #tpu.memory_space<vmem>>, vector<1x32x1xf32>
    %290 = vector.shape_cast %289 : vector<1x32x1xf32> to vector<32x1xf32>
    %291 = vector.broadcast %290 : vector<32x1xf32> to vector<32x8xf32>
    %292 = arith.subf %0, %291 : vector<32x8xf32>
    %293 = arith.mulf %292, %292 : vector<32x8xf32>
    %c11_136 = arith.constant 11 : index
    %c0_137 = arith.constant 0 : index
    %c0_138 = arith.constant 0 : index
    %294 = vector.load %arg3[%c11_136, %c0_137, %c0_138] : memref<12x32x1xf32, #tpu.memory_space<vmem>>, vector<1x32x1xf32>
    %295 = vector.shape_cast %294 : vector<1x32x1xf32> to vector<32x1xf32>
    %296 = vector.broadcast %295 : vector<32x1xf32> to vector<32x8xf32>
    %297 = arith.mulf %293, %296 : vector<32x8xf32>
    %298 = arith.maximumf %279, %288 : vector<32x8xf32>
    %299 = arith.maximumf %298, %297 : vector<32x8xf32>
    %300 = arith.subf %279, %299 : vector<32x8xf32>
    %301 = math.exp %300 : vector<32x8xf32>
    %302 = arith.subf %288, %299 : vector<32x8xf32>
    %303 = math.exp %302 : vector<32x8xf32>
    %304 = arith.subf %297, %299 : vector<32x8xf32>
    %305 = math.exp %304 : vector<32x8xf32>
    %cst_139 = arith.constant dense<0.000000e+00> : vector<8xf32>
    %306 = vector.multi_reduction <add>, %299, %cst_139 [0] : vector<32x8xf32> to vector<8xf32>
    %307 = vector.shape_cast %306 : vector<8xf32> to vector<1x8xf32>
    %c18 = arith.constant 18 : index
    %c0_140 = arith.constant 0 : index
    %c0_141 = arith.constant 0 : index
    %308 = vector.load %arg4[%c18, %c0_140, %c0_141] : memref<24x32x1xf32, #tpu.memory_space<vmem>>, vector<1x32x1xf32>
    %309 = vector.shape_cast %308 : vector<1x32x1xf32> to vector<32x1xf32>
    %310 = vector.broadcast %309 : vector<32x1xf32> to vector<32x8xf32>
    %311 = arith.mulf %301, %310 : vector<32x8xf32>
    %c19 = arith.constant 19 : index
    %c0_142 = arith.constant 0 : index
    %c0_143 = arith.constant 0 : index
    %312 = vector.load %arg4[%c19, %c0_142, %c0_143] : memref<24x32x1xf32, #tpu.memory_space<vmem>>, vector<1x32x1xf32>
    %313 = vector.shape_cast %312 : vector<1x32x1xf32> to vector<32x1xf32>
    %314 = vector.broadcast %313 : vector<32x1xf32> to vector<32x8xf32>
    %315 = arith.mulf %303, %314 : vector<32x8xf32>
    %316 = arith.addf %311, %315 : vector<32x8xf32>
    %c20 = arith.constant 20 : index
    %c0_144 = arith.constant 0 : index
    %c0_145 = arith.constant 0 : index
    %317 = vector.load %arg4[%c20, %c0_144, %c0_145] : memref<24x32x1xf32, #tpu.memory_space<vmem>>, vector<1x32x1xf32>
    %318 = vector.shape_cast %317 : vector<1x32x1xf32> to vector<32x1xf32>
    %319 = vector.broadcast %318 : vector<32x1xf32> to vector<32x8xf32>
    %320 = arith.mulf %305, %319 : vector<32x8xf32>
    %321 = arith.addf %316, %320 : vector<32x8xf32>
    %322 = math.log %321 : vector<32x8xf32>
    %cst_146 = arith.constant dense<0.000000e+00> : vector<8xf32>
    %323 = vector.multi_reduction <add>, %322, %cst_146 [0] : vector<32x8xf32> to vector<8xf32>
    %324 = vector.shape_cast %323 : vector<8xf32> to vector<1x8xf32>
    %325 = arith.addf %324, %307 : vector<1x8xf32>
    %c3_147 = arith.constant 3 : index
    %c0_148 = arith.constant 0 : index
    %326 = memref.load %arg5[%c3_147, %c0_148] : memref<4x2xf32, #tpu.memory_space<smem>>
    %327 = vector.broadcast %326 : f32 to vector<1x8xf32>
    %328 = arith.addf %325, %327 : vector<1x8xf32>
    %c21 = arith.constant 21 : index
    %c0_149 = arith.constant 0 : index
    %c0_150 = arith.constant 0 : index
    %329 = vector.load %arg4[%c21, %c0_149, %c0_150] : memref<24x32x1xf32, #tpu.memory_space<vmem>>, vector<1x32x1xf32>
    %330 = vector.shape_cast %329 : vector<1x32x1xf32> to vector<32x1xf32>
    %331 = vector.broadcast %330 : vector<32x1xf32> to vector<32x8xf32>
    %332 = arith.mulf %301, %331 : vector<32x8xf32>
    %c22 = arith.constant 22 : index
    %c0_151 = arith.constant 0 : index
    %c0_152 = arith.constant 0 : index
    %333 = vector.load %arg4[%c22, %c0_151, %c0_152] : memref<24x32x1xf32, #tpu.memory_space<vmem>>, vector<1x32x1xf32>
    %334 = vector.shape_cast %333 : vector<1x32x1xf32> to vector<32x1xf32>
    %335 = vector.broadcast %334 : vector<32x1xf32> to vector<32x8xf32>
    %336 = arith.mulf %303, %335 : vector<32x8xf32>
    %337 = arith.addf %332, %336 : vector<32x8xf32>
    %c23 = arith.constant 23 : index
    %c0_153 = arith.constant 0 : index
    %c0_154 = arith.constant 0 : index
    %338 = vector.load %arg4[%c23, %c0_153, %c0_154] : memref<24x32x1xf32, #tpu.memory_space<vmem>>, vector<1x32x1xf32>
    %339 = vector.shape_cast %338 : vector<1x32x1xf32> to vector<32x1xf32>
    %340 = vector.broadcast %339 : vector<32x1xf32> to vector<32x8xf32>
    %341 = arith.mulf %305, %340 : vector<32x8xf32>
    %342 = arith.addf %337, %341 : vector<32x8xf32>
    %343 = math.log %342 : vector<32x8xf32>
    %cst_155 = arith.constant dense<0.000000e+00> : vector<8xf32>
    %344 = vector.multi_reduction <add>, %343, %cst_155 [0] : vector<32x8xf32> to vector<8xf32>
    %345 = vector.shape_cast %344 : vector<8xf32> to vector<1x8xf32>
    %346 = arith.addf %345, %307 : vector<1x8xf32>
    %c3_156 = arith.constant 3 : index
    %c1_157 = arith.constant 1 : index
    %347 = memref.load %arg5[%c3_156, %c1_157] : memref<4x2xf32, #tpu.memory_space<smem>>
    %348 = vector.broadcast %347 : f32 to vector<1x8xf32>
    %349 = arith.addf %346, %348 : vector<1x8xf32>
    %350 = arith.maximumf %328, %349 : vector<1x8xf32>
    %351 = arith.subf %328, %350 : vector<1x8xf32>
    %352 = math.exp %351 : vector<1x8xf32>
    %353 = arith.subf %349, %350 : vector<1x8xf32>
    %354 = math.exp %353 : vector<1x8xf32>
    %355 = arith.addf %352, %354 : vector<1x8xf32>
    %356 = math.log %355 : vector<1x8xf32>
    %357 = arith.addf %356, %350 : vector<1x8xf32>
    %cst_158 = arith.constant 29.4060326 : f32
    %358 = vector.broadcast %cst_158 : f32 to vector<1x8xf32>
    %359 = arith.subf %357, %358 : vector<1x8xf32>
    %c3_159 = arith.constant 3 : index
    %c0_160 = arith.constant 0 : index
    %360 = vector.load %arg6[%c3_159, %c0_160] : memref<4x8xf32, #tpu.memory_space<vmem>>, vector<1x8xf32>
    tpu.vector_store %arg6[%c3_159, %c0_160], %359 {strides = array<i32>} : memref<4x8xf32, #tpu.memory_space<vmem>>, vector<1x8xf32>,
    return
  }
  func.func @transform_0(%arg0: i32) -> (i32, i32) {
    %c0_i32 = arith.constant 0 : i32
    %c0_i32_0 = arith.constant 0 : i32
    return %c0_i32, %arg0 : i32, i32
  }
  func.func @transform_1(%arg0: i32) -> (i32, i32, i32) {
    %c0_i32 = arith.constant 0 : i32
    %c0_i32_0 = arith.constant 0 : i32
    %c0_i32_1 = arith.constant 0 : i32
    %c0_i32_2 = arith.constant 0 : i32
    return %c0_i32, %c0_i32_0, %c0_i32_1 : i32, i32, i32
  }
  func.func @transform_2(%arg0: i32) -> (i32, i32, i32) {
    %c0_i32 = arith.constant 0 : i32
    %c0_i32_0 = arith.constant 0 : i32
    %c0_i32_1 = arith.constant 0 : i32
    %c0_i32_2 = arith.constant 0 : i32
    return %c0_i32, %c0_i32_0, %c0_i32_1 : i32, i32, i32
  }
  func.func @transform_3(%arg0: i32) -> (i32, i32, i32) {
    %c0_i32 = arith.constant 0 : i32
    %c0_i32_0 = arith.constant 0 : i32
    %c0_i32_1 = arith.constant 0 : i32
    %c0_i32_2 = arith.constant 0 : i32
    return %c0_i32, %c0_i32_0, %c0_i32_1 : i32, i32, i32
  }
  func.func @transform_4(%arg0: i32) -> (i32, i32) {
    %c0_i32 = arith.constant 0 : i32
    %c0_i32_0 = arith.constant 0 : i32
    %c0_i32_1 = arith.constant 0 : i32
    return %c0_i32, %c0_i32_0 : i32, i32
  }
  func.func @transform_5(%arg0: i32) -> (i32, i32) {
    %c0_i32 = arith.constant 0 : i32
    %c0_i32_0 = arith.constant 0 : i32
    return %c0_i32, %arg0 : i32, i32
  }
}

</mosaic_0001>

<bundles_post_ra>
// kernel: tpu_custom_call.1
= control target key start
LH: loop header
LB: loop body
LE: loop exit
PB: predicated region body
PF: predicated region fallthrough
CT: control target
= control target key end

     0   :  { %10 = vsyncpa [#allocation4], 0  ;;  %s3579_s0 = inlined_call_operand.vmem [shape: f32[32,8], index: 0, kind: input, shape index: {}]   ;;  %s3580_s1 = inlined_call_operand.vmem [shape: f32[12,32,1], index: 1, kind: input, shape index: {}]   ;;  %s3581_s2 = inlined_call_operand.vmem [shape: f32[12,32,1], index: 2, kind: input, shape index: {}]   ;;  %s3582_s3 = inlined_call_operand.vmem [shape: f32[24,32,1], index: 3, kind: input, shape index: {}]   ;;  %s3583_s4 = inlined_call_operand.vmem [shape: f32[4,2], index: 4, kind: input, shape index: {}]   ;;  %s3584_s5 = inlined_call_operand.hbm [shape: f32[4,8], index: 5, kind: output, shape index: {}]  }
   0x1   :  { %11 = vsyncpa [#allocation3], 0  ;;  %s26_s20 = sshll.u32 %s3583_s4, 4  ;;  %s27_s20 = int_to_ptr.vmem [resolvable:$true] %s26_s20 }
   0x2   :  { %s2420_s21 = scalar_lea.vmem %s27_s20, 64  ;;  %p2425_p1 = scmp.lt.s32.totalorder %s27_s20, %s27_s20 }
   0x3   :  { %p2421_p0 = scmp.ne.s32.totalorder %s27_s20, %s2420_s21  ;;  %p2426_p2 = scmp.lt.s32.totalorder %s2420_s21, %s2420_s21 }
   0x5   :  { %p2427_p3 = por %p2426_p2, %p2425_p1 }
   0x7   :  { %p2428_p4 = pnand %p2427_p3, %p2421_p0 }
   0x9   :  { %2431 = shalt.err (!%p2428_p4)
}
   0xa   :  { %s2458_s22 = smov [#allocation2]  }
   0xb   :  { %29 = dma.vmem_to_smem %s27_s20, 64, %s2458_s22, [#allocation4]  }
   0xc   :  { %2454 = dma.done.wait [#allocation4], 64  }
   0xd   :  { %2455 = vsyncadd [#allocation4], 4294967232 }
   0xe   :  { %33 = sfence }
   0xf   :  { %v40_v0 = vld [vmem:[%s3580_s1 + $0x10] sm:$0xff]  ;;  %v38_v1 = vld [vmem:[%s3580_s1] sm:$0xff]  ;;  %v2459_v2 = vmov 0   ;;  %v41_v3 = vld [vmem:[%s3580_s1 + $0x18] sm:$0xff]  ;;  %vm266_vm0 = vcmask 64512   ;;  %s3031_s23 = sld [smem:[#allocation2]] }
  0x10   :  { %2231 = vset.pattern.permute.xlu1 %v2459_v2  ;;  %2230 = vset.pattern.permute.xlu0 %v2459_v2  ;;  %v39_v4 = vld [vmem:[%s3580_s1 + $0x8] sm:$0xff]  ;;  %v70_v6 = vld [vmem:[%s3581_s2] sm:$0xff]  ;;  %v73_v7 = vld [vmem:[%s3581_s2 + $0x18] sm:$0xff]  ;;  %s3033_s24 = sld [smem:[#allocation2 + $0x1]]  ;;  %vm531_vm1 = vcmask 57344   ;;  %s3339_s21 = sld [smem:[#allocation2 + $0x80]] }
  0x11   :  { %54 = vperm.xlu1 %2231, %v40_v0   ;;  %44 = vperm.xlu0 %2230, %v38_v1   ;;  %v71_v5 = vld [vmem:[%s3581_s2 + $0x8] sm:$0xff]  ;;  %v72_v8 = vld [vmem:[%s3581_s2 + $0x10] sm:$0xff]  ;;  %v2036_v10 = vld [vmem:[%s3580_s1 + $0x20] sm:$0xff]  ;;  %s3341_s22 = sld [smem:[#allocation2 + $0x81]]  ;;  %s2212_s6 = sld [smem:[#allocation2 + $0x180]] }
  0x12   :  { %v2037_v9 = vld [vmem:[%s3580_s1 + $0x28] sm:$0xff]  ;;  %v2039_v11 = vld [vmem:[%s3580_s1 + $0x38] sm:$0xff]  ;;  %v2038_v12 = vld [vmem:[%s3580_s1 + $0x30] sm:$0xff]  ;;  %s2174_s29 = sld [smem:[#allocation2 + $0x101]]  ;;  %s2460_s7 = smov [#allocation5]  }
  0x13   :  { %v2041_v13 = vld [vmem:[%s3581_s2 + $0x28] sm:$0xff]  ;;  %v2040_v14 = vld [vmem:[%s3581_s2 + $0x20] sm:$0xff]  ;;  %v2043_v15 = vld [vmem:[%s3581_s2 + $0x38] sm:$0xff]  ;;  %s2225_s30 = sld [smem:[#allocation2 + $0x181]]  ;;  %s2027_s8 = sshll.u32 %s2460_s7, 4  ;;  %s2028_s8 = int_to_ptr.vmem [resolvable:$true] %s2027_s8 }
  0x14   :  { %v2042_v16 = vld [vmem:[%s3581_s2 + $0x30] sm:$0xff]  ;;  %v2045_v17 = vld [vmem:[%s3580_s1 + $0x48] sm:$0xff]  ;;  %v2044_v18 = vld [vmem:[%s3580_s1 + $0x40] sm:$0xff]  ;;  %s2432_s9 = scalar_lea.vmem %s2028_s8, 64  ;;  %p2437_p6 = scmp.lt.s32.totalorder %s2028_s8, %s2028_s8 }
  0x15   :  { %59 = vperm.xlu1 %2231, %v41_v3   ;;  %49 = vperm.xlu0 %2230, %v39_v4   ;;  %v2047_v19 = vld [vmem:[%s3580_s1 + $0x58] sm:$0xff]  ;;  %v2046_v20 = vld [vmem:[%s3580_s1 + $0x50] sm:$0xff]  ;;  %v2049_v21 = vld [vmem:[%s3581_s2 + $0x48] sm:$0xff]  ;;  %p2433_p5 = scmp.ne.s32.totalorder %s2028_s8, %s2432_s9  ;;  %p2438_p7 = scmp.lt.s32.totalorder %s2432_s9, %s2432_s9 }
  0x16   :  { %v2048_v22 = vld [vmem:[%s3581_s2 + $0x40] sm:$0xff]  ;;  %v2051_v23 = vld [vmem:[%s3581_s2 + $0x58] sm:$0xff]  ;;  %v2050_v24 = vld [vmem:[%s3581_s2 + $0x50] sm:$0xff] }
  0x17   :  { %v281_v25 = vld [vmem:[%s3582_s3 + $0x8] sm:$0xff]  ;;  %v280_v26 = vld [vmem:[%s3582_s3] sm:$0xff]  ;;  %v283_v27 = vld [vmem:[%s3582_s3 + $0x18] sm:$0xff]  ;;  %p2439_p8 = por %p2438_p7, %p2437_p6 }
  0x18   :  { %v282_v28 = vld [vmem:[%s3582_s3 + $0x10] sm:$0xff]  ;;  %v2053_v29 = vld [vmem:[%s3582_s3 + $0x28] sm:$0xff]  ;;  %v2052_v30 = vld [vmem:[%s3582_s3 + $0x20] sm:$0xff] }
  0x19   :  { %81 = vperm.xlu1 %2231, %v71_v5   ;;  %76 = vperm.xlu0 %2230, %v70_v6   ;;  %v2055_v31 = vld [vmem:[%s3582_s3 + $0x38] sm:$0xff]  ;;  %v2054_v32 = vld [vmem:[%s3582_s3 + $0x30] sm:$0xff]  ;;  %v2057_v33 = vld [vmem:[%s3582_s3 + $0x48] sm:$0xff]  ;;  %p2440_p9 = pnand %p2439_p8, %p2433_p5 }
  0x1a   :  { %v2056_v34 = vld [vmem:[%s3582_s3 + $0x40] sm:$0xff]  ;;  %v2059_v35 = vld [vmem:[%s3582_s3 + $0x58] sm:$0xff]  ;;  %v2058_v36 = vld [vmem:[%s3582_s3 + $0x50] sm:$0xff] }
  0x1b   :  { %v2061_v37 = vld [vmem:[%s3582_s3 + $0x68] sm:$0xff]  ;;  %v2060_v38 = vld [vmem:[%s3582_s3 + $0x60] sm:$0xff]  ;;  %v2063_v39 = vld [vmem:[%s3582_s3 + $0x78] sm:$0xff] }
  0x1c   :  { %v2062_v40 = vld [vmem:[%s3582_s3 + $0x70] sm:$0xff]  ;;  %v2065_v41 = vld [vmem:[%s3582_s3 + $0x88] sm:$0xff]  ;;  %v2064_v42 = vld [vmem:[%s3582_s3 + $0x80] sm:$0xff] }
  0x1d   :  { %91 = vperm.xlu1 %2231, %v73_v7   ;;  %86 = vperm.xlu0 %2230, %v72_v8   ;;  %v2067_v43 = vld [vmem:[%s3582_s3 + $0x98] sm:$0xff]  ;;  %v2066_v44 = vld [vmem:[%s3582_s3 + $0x90] sm:$0xff]  ;;  %v2069_v45 = vld [vmem:[%s3582_s3 + $0xa8] sm:$0xff] }
  0x1e   :  { %v2068_v46 = vld [vmem:[%s3582_s3 + $0xa0] sm:$0xff]  ;;  %v2071_v47 = vld [vmem:[%s3582_s3 + $0xb8] sm:$0xff]  ;;  %v2070_v48 = vld [vmem:[%s3582_s3 + $0xb0] sm:$0xff] }
  0x1f   :  { %v2075_v49 = vld [vmem:[%s3580_s1 + $0x68] sm:$0xff]  ;;  %v2074_v50 = vld [vmem:[%s3580_s1 + $0x60] sm:$0xff]  ;;  %v2077_v51 = vld [vmem:[%s3580_s1 + $0x78] sm:$0xff] }
  0x20   :  { %v2076_v52 = vld [vmem:[%s3580_s1 + $0x70] sm:$0xff]  ;;  %v2079_v53 = vld [vmem:[%s3581_s2 + $0x68] sm:$0xff]  ;;  %v2078_v54 = vld [vmem:[%s3581_s2 + $0x60] sm:$0xff] }
  0x21   :  { %110 = vperm.xlu1 %2231, %v2037_v9   ;;  %105 = vperm.xlu0 %2230, %v2036_v10   ;;  %v2081_v55 = vld [vmem:[%s3581_s2 + $0x78] sm:$0xff]  ;;  %v2080_v56 = vld [vmem:[%s3581_s2 + $0x70] sm:$0xff]  ;;  %v2083_v57 = vld [vmem:[%s3580_s1 + $0x88] sm:$0xff] }
  0x22   :  { %v2082_v58 = vld [vmem:[%s3580_s1 + $0x80] sm:$0xff]  ;;  %v2085_v59 = vld [vmem:[%s3580_s1 + $0x98] sm:$0xff]  ;;  %v2084_v60 = vld [vmem:[%s3580_s1 + $0x90] sm:$0xff] }
  0x23   :  { %v2087_v61 = vld [vmem:[%s3581_s2 + $0x88] sm:$0xff]  ;;  %v2086_v62 = vld [vmem:[%s3581_s2 + $0x80] sm:$0xff]  ;;  %v2089_v63 = vld [vmem:[%s3581_s2 + $0x98] sm:$0xff] }
  0x24   :  { %v2088_v0 = vld [vmem:[%s3581_s2 + $0x90] sm:$0xff]  ;;  %v2091_v1 = vld [vmem:[%s3580_s1 + $0xa8] sm:$0xff]  ;;  %v2090_v2 = vld [vmem:[%s3580_s1 + $0xa0] sm:$0xff] }
  0x25   :  { %120 = vperm.xlu1 %2231, %v2039_v11   ;;  %115 = vperm.xlu0 %2230, %v2038_v12   ;;  %v2093_v5 = vld [vmem:[%s3580_s1 + $0xb8] sm:$0xff]  ;;  %v2092_v6 = vld [vmem:[%s3580_s1 + $0xb0] sm:$0xff]  ;;  %v2095_v9 = vld [vmem:[%s3581_s2 + $0xa8] sm:$0xff] }
  0x26   :  { %v2094_v10 = vld [vmem:[%s3581_s2 + $0xa0] sm:$0xff] }
  0x29   :  { %143 = vperm.xlu1 %2231, %v2041_v13   ;;  %138 = vperm.xlu0 %2230, %v2040_v14   ;;  %v2097_v13 = vld [vmem:[%s3581_s2 + $0xb8] sm:$0xff]  ;;  %v2096_v14 = vld [vmem:[%s3581_s2 + $0xb0] sm:$0xff] }
  0x2d   :  { %153 = vperm.xlu1 %2231, %v2043_v15   ;;  %148 = vperm.xlu0 %2230, %v2042_v16  }
  0x31   :  { %172 = vperm.xlu1 %2231, %v2045_v17   ;;  %167 = vperm.xlu0 %2230, %v2044_v18   ;;  %v2099_v17 = vld [vmem:[%s3582_s3 + $0xc8] sm:$0xff]  ;;  %v2098_v18 = vld [vmem:[%s3582_s3 + $0xc0] sm:$0xff] }
  0x35   :  { %182 = vperm.xlu1 %2231, %v2047_v19   ;;  %177 = vperm.xlu0 %2230, %v2046_v20  }
  0x39   :  { %205 = vperm.xlu1 %2231, %v2049_v21   ;;  %200 = vperm.xlu0 %2230, %v2048_v22   ;;  %v2101_v21 = vld [vmem:[%s3582_s3 + $0xd8] sm:$0xff]  ;;  %v2100_v22 = vld [vmem:[%s3582_s3 + $0xd0] sm:$0xff] }
  0x3d   :  { %215 = vperm.xlu1 %2231, %v2051_v23   ;;  %210 = vperm.xlu0 %2230, %v2050_v24  }
  0x41   :  { %291 = vperm.xlu1 %2231, %v281_v25   ;;  %286 = vperm.xlu0 %2230, %v280_v26   ;;  %v2103_v25 = vld [vmem:[%s3582_s3 + $0xe8] sm:$0xff]  ;;  %v2102_v26 = vld [vmem:[%s3582_s3 + $0xe0] sm:$0xff] }
  0x45   :  { %301 = vperm.xlu1 %2231, %v283_v27   ;;  %296 = vperm.xlu0 %2230, %v282_v28  }
  0x49   :  { %320 = vperm.xlu1 %2231, %v2053_v29   ;;  %315 = vperm.xlu0 %2230, %v2052_v30   ;;  %v2105_v29 = vld [vmem:[%s3582_s3 + $0xf8] sm:$0xff]  ;;  %v2104_v30 = vld [vmem:[%s3582_s3 + $0xf0] sm:$0xff] }
  0x4d   :  { %330 = vperm.xlu1 %2231, %v2055_v31   ;;  %325 = vperm.xlu0 %2230, %v2054_v32   ;;  %v2747_v31 = vld [vmem:[%s3579_s0 + $0x8] sm:$0xff] }
  0x51   :  { %353 = vperm.xlu1 %2231, %v2057_v33   ;;  %348 = vperm.xlu0 %2230, %v2056_v34   ;;  %v2752_v34 = vld [vmem:[%s3579_s0] sm:$0xff] }
  0x55   :  { %363 = vperm.xlu1 %2231, %v2059_v35   ;;  %358 = vperm.xlu0 %2230, %v2058_v36  }
  0x59   :  { %411 = vperm.xlu1 %2231, %v2061_v37   ;;  %406 = vperm.xlu0 %2230, %v2060_v38   ;;  %v2107_v37 = vld [vmem:[%s3582_s3 + $0x108] sm:$0xff]  ;;  %v2106_v38 = vld [vmem:[%s3582_s3 + $0x100] sm:$0xff] }
  0x5d   :  { %421 = vperm.xlu1 %2231, %v2063_v39   ;;  %416 = vperm.xlu0 %2230, %v2062_v40  }
  0x61   :  { %440 = vperm.xlu1 %2231, %v2065_v41   ;;  %435 = vperm.xlu0 %2230, %v2064_v42  }
  0x65   :  { %450 = vperm.xlu1 %2231, %v2067_v43   ;;  %445 = vperm.xlu0 %2230, %v2066_v44  }
  0x69   :  { %473 = vperm.xlu1 %2231, %v2069_v45   ;;  %468 = vperm.xlu0 %2230, %v2068_v46   ;;  %v2109_v45 = vld [vmem:[%s3582_s3 + $0x118] sm:$0xff]  ;;  %v2108_v46 = vld [vmem:[%s3582_s3 + $0x110] sm:$0xff] }
  0x6d   :  { %483 = vperm.xlu1 %2231, %v2071_v47   ;;  %478 = vperm.xlu0 %2230, %v2070_v48  }
  0x71   :  { %545 = vperm.xlu1 %2231, %v2075_v49   ;;  %540 = vperm.xlu0 %2230, %v2074_v50  }
  0x75   :  { %555 = vperm.xlu1 %2231, %v2077_v51   ;;  %550 = vperm.xlu0 %2230, %v2076_v52  }
  0x79   :  { %578 = vperm.xlu1 %2231, %v2079_v53   ;;  %573 = vperm.xlu0 %2230, %v2078_v54   ;;  %v2777_v53 = vld [vmem:[%s3579_s0 + $0x10] sm:$0xff] }
  0x7d   :  { %588 = vperm.xlu1 %2231, %v2081_v55   ;;  %583 = vperm.xlu0 %2230, %v2080_v56   ;;  %v2782_v55 = vld [vmem:[%s3579_s0 + $0x18] sm:$0xff] }
  0x81   :  { %607 = vperm.xlu1 %2231, %v2083_v57   ;;  %602 = vperm.xlu0 %2230, %v2082_v58  }
  0x85   :  { %617 = vperm.xlu1 %2231, %v2085_v59   ;;  %612 = vperm.xlu0 %2230, %v2084_v60   ;;  %v2112_v59 = vld [vmem:[%s3582_s3 + $0x128] sm:$0xff]  ;;  %v2111_v60 = vld [vmem:[%s3582_s3 + $0x120] sm:$0xff] }
  0x89   :  { %640 = vperm.xlu1 %2231, %v2087_v61   ;;  %635 = vperm.xlu0 %2230, %v2086_v62  }
  0x8d   :  { %650 = vperm.xlu1 %2231, %v2089_v63   ;;  %645 = vperm.xlu0 %2230, %v2088_v0  }
  0x90   :  { %v2692_v3 = vpop.permute.xlu1 %54  ;;  %v45_v4 = vpop.permute.xlu0 %44 }
  0x91   :  { %669 = vperm.xlu1 %2231, %v2091_v1   ;;  %664 = vperm.xlu0 %2230, %v2090_v2   ;;  %v62_v42 = vsub.f32 %v2752_v34, %v45_v4  ;;  %v64_v1 = vsub.f32 %v2777_v53, %v2692_v3  ;;  %v2114_v3 = vld [vmem:[%s3582_s3 + $0x138] sm:$0xff] }
  0x93   :  { %v66_v54 = vmul.f32 %v62_v42, %v62_v42 }
  0x94   :  { %v2700_v7 = vpop.permute.xlu1 %59  ;;  %v50_v8 = vpop.permute.xlu0 %49 }
  0x95   :  { %679 = vperm.xlu1 %2231, %v2093_v5   ;;  %674 = vperm.xlu0 %2230, %v2092_v6   ;;  %v63_v35 = vsub.f32 %v2747_v31, %v50_v8  ;;  %v65_v2 = vsub.f32 %v2782_v55, %v2700_v7  ;;  %v2113_v7 = vld [vmem:[%s3582_s3 + $0x130] sm:$0xff] }
  0x97   :  { %v67_v43 = vmul.f32 %v63_v35, %v63_v35 }
  0x98   :  { %v82_v11 = vpop.permute.xlu1 %81  ;;  %v2708_v12 = vpop.permute.xlu0 %76 }
  0x99   :  { %702 = vperm.xlu1 %2231, %v2095_v9   ;;  %697 = vperm.xlu0 %2230, %v2094_v10   ;;  %v95_v57 = vmul.f32 %v82_v11, %v67_v43  ;;  %v94_v61 = vmul.f32 %v2708_v12, %v66_v54 }
  0x9c   :  { %v2716_v15 = vpop.permute.xlu1 %91  ;;  %v2718_v16 = vpop.permute.xlu0 %86 }
  0x9d   :  { %712 = vperm.xlu1 %2231, %v2097_v13   ;;  %707 = vperm.xlu0 %2230, %v2096_v14  }
  0xa0   :  { %v111_v19 = vpop.permute.xlu1 %110  ;;  %v106_v20 = vpop.permute.xlu0 %105 }
  0xa1   :  { %788 = vperm.xlu1 %2231, %v2099_v17   ;;  %783 = vperm.xlu0 %2230, %v2098_v18   ;;  %v124_v36 = vsub.f32 %v2747_v31, %v111_v19  ;;  %v123_v39 = vsub.f32 %v2752_v34, %v106_v20  ;;  %v69_v19 = vmul.f32 %v65_v2, %v65_v2 }
  0xa3   :  { %v128_v44 = vmul.f32 %v124_v36, %v124_v36  ;;  %v127_v47 = vmul.f32 %v123_v39, %v123_v39 }
  0xa4   :  { %v121_v23 = vpop.permute.xlu1 %120  ;;  %v116_v24 = vpop.permute.xlu0 %115 }
  0xa5   :  { %798 = vperm.xlu1 %2231, %v2101_v21   ;;  %793 = vperm.xlu0 %2230, %v2100_v22   ;;  %v126_v58 = vsub.f32 %v2782_v55, %v121_v23  ;;  %v125_v62 = vsub.f32 %v2777_v53, %v116_v24  ;;  %v68_v23 = vmul.f32 %v64_v1, %v64_v1 }
  0xa7   :  { %v130_v11 = vmul.f32 %v126_v58, %v126_v58  ;;  %v129_v13 = vmul.f32 %v125_v62, %v125_v62 }
  0xa8   :  { %v144_v27 = vpop.permute.xlu1 %143  ;;  %v139_v28 = vpop.permute.xlu0 %138 }
  0xa9   :  { %817 = vperm.xlu1 %2231, %v2103_v25   ;;  %812 = vperm.xlu0 %2230, %v2102_v26   ;;  %v2772_v50 = vmul.f32 %v144_v27, %v128_v44  ;;  %v2784_v56 = vmul.f32 %v139_v28, %v127_v47  ;;  %v97_v26 = vmul.f32 %v2716_v15, %v69_v19  ;;  %v2125_v19 = vld [vmem:[%s3580_s1 + $0xc0] sm:$0xff] }
  0xab   :  { %v223_v4 = vmax.f32 %v95_v57, %v2772_v50  ;;  %v222_v8 = vmax.f32 %v94_v61, %v2784_v56 }
  0xac   :  { %v154_v32 = vpop.permute.xlu1 %153  ;;  %v149_v33 = vpop.permute.xlu0 %148 }
  0xad   :  { %827 = vperm.xlu1 %2231, %v2105_v29   ;;  %822 = vperm.xlu0 %2230, %v2104_v30   ;;  %v2813_v20 = vmul.f32 %v154_v32, %v130_v11  ;;  %v2815_v24 = vmul.f32 %v149_v33, %v129_v13  ;;  %v2116_v30 = vld [vmem:[%s3582_s3 + $0x148] sm:$0xff]  ;;  %v2115_v32 = vld [vmem:[%s3582_s3 + $0x140] sm:$0xff]  ;;  %v96_v33 = vmul.f32 %v2718_v16, %v68_v23  ;;  %v2118_v16 = vld [vmem:[%s3582_s3 + $0x158] sm:$0xff] }
  0xae   :  { %v2121_v11 = vld [vmem:[%s3582_s3 + $0x170] sm:$0xff] }
  0xaf   :  { %v225_v15 = vmax.f32 %v97_v26, %v2813_v20 }
  0xb0   :  { %v173_v40 = vpop.permute.xlu1 %172  ;;  %v168_v41 = vpop.permute.xlu0 %167 }
  0xb1   :  { %850 = vperm.xlu1 %2231, %v2107_v37   ;;  %845 = vperm.xlu0 %2230, %v2106_v38   ;;  %v186_v48 = vsub.f32 %v2747_v31, %v173_v40  ;;  %v185_v49 = vsub.f32 %v2752_v34, %v168_v41  ;;  %v224_v41 = vmax.f32 %v96_v33, %v2815_v24 }
  0xb3   :  { %v190_v63 = vmul.f32 %v186_v48, %v186_v48  ;;  %v189_v0 = vmul.f32 %v185_v49, %v185_v49 }
  0xb4   :  { %v183_v51 = vpop.permute.xlu1 %182  ;;  %v178_v52 = vpop.permute.xlu0 %177 }
  0xb5   :  { %860 = vperm.xlu1 %2231, %v2109_v45   ;;  %855 = vperm.xlu0 %2230, %v2108_v46   ;;  %v188_v12 = vsub.f32 %v2782_v55, %v183_v51  ;;  %v187_v14 = vsub.f32 %v2777_v53, %v178_v52  ;;  %v2117_v46 = vld [vmem:[%s3582_s3 + $0x150] sm:$0xff] }
  0xb7   :  { %v192_v27 = vmul.f32 %v188_v12, %v188_v12  ;;  %v191_v35 = vmul.f32 %v187_v14, %v187_v14  ;;  %v2126_v14 = vld [vmem:[%s3580_s1 + $0xc8] sm:$0xff] }
  0xb8   :  { %v206_v5 = vpop.permute.xlu1 %205  ;;  %v201_v6 = vpop.permute.xlu0 %200 }
  0xb9   :  { %v219_v9 = vmul.f32 %v206_v5, %v190_v63  ;;  %v218_v10 = vmul.f32 %v201_v6, %v189_v0  ;;  %908 = vperm.xlu1 %2231, %v2112_v59   ;;  %903 = vperm.xlu0 %2230, %v2111_v60   ;;  %v2120_v63 = vld [vmem:[%s3582_s3 + $0x168] sm:$0xff] }
  0xbb   :  { %v2809_v17 = vmax.f32 %v223_v4, %v219_v9  ;;  %v2811_v18 = vmax.f32 %v222_v8, %v218_v10 }
  0xbc   :  { %v216_v21 = vpop.permute.xlu1 %215  ;;  %v211_v22 = vpop.permute.xlu0 %210 }
  0xbd   :  { %v255_v25 = vsub.f32 %v219_v9, %v2809_v17  ;;  %918 = vperm.xlu1 %2231, %v2114_v3   ;;  %913 = vperm.xlu0 %2230, %v2113_v7   ;;  %v231_v28 = vsub.f32 %v95_v57, %v2809_v17  ;;  %v254_v29 = vsub.f32 %v218_v10, %v2811_v18  ;;  %v2122_v10 = vld [vmem:[%s3582_s3 + $0x178] sm:$0xff] }
  0xbe   :  { %v230_v36 = vsub.f32 %v94_v61, %v2811_v18  ;;  %v221_v38 = vmul.f32 %v216_v21, %v192_v27  ;;  %v220_v43 = vmul.f32 %v211_v22, %v191_v35  ;;  %v243_v49 = vsub.f32 %v2772_v50, %v2809_v17  ;;  %v2127_v27 = vld [vmem:[%s3580_s1 + $0xd0] sm:$0xff] }
  0xbf   :  { %v260_v37 = vmul.f32 1.442695, %v255_v25  ;;  %v258_v42 = vmul.f32 1.442695, %v254_v29  ;;  %v236_v44 = vmul.f32 1.442695, %v231_v28  ;;  %v242_v58 = vsub.f32 %v2784_v56, %v2811_v18 }
  0xc0   :  { %v2830_v39 = vpop.permute.xlu1 %291  ;;  %v2832_v40 = vpop.permute.xlu0 %286  ;;  %v2835_v45 = vmax.f32 %v225_v15, %v221_v38  ;;  %v234_v47 = vmul.f32 1.442695, %v230_v36  ;;  %v2843_v48 = vmax.f32 %v224_v41, %v220_v43  ;;  %v2119_v56 = vld [vmem:[%s3582_s3 + $0x160] sm:$0xff]  ;;  %v248_v4 = vmul.f32 1.442695, %v243_v49 }
  0xc1   :  { %937 = vperm.xlu1 %2231, %v2116_v30   ;;  %932 = vperm.xlu0 %2230, %v2115_v32   ;;  %2232 = vpow2.f32 %v260_v37  ;;  %v246_v8 = vmul.f32 1.442695, %v242_v58  ;;  %v2130_v37 = vld [vmem:[%s3581_s2 + $0xc8] sm:$0xff] }
  0xc2   :  { %v233_v51 = vsub.f32 %v97_v26, %v2835_v45  ;;  %v257_v52 = vsub.f32 %v221_v38, %v2835_v45  ;;  %2234 = vpow2.f32 %v258_v42  ;;  %v232_v59 = vsub.f32 %v96_v33, %v2843_v48  ;;  %v2128_v26 = vld [vmem:[%s3580_s1 + $0xd8] sm:$0xff] }
  0xc3   :  { %v256_v60 = vsub.f32 %v220_v43, %v2843_v48  ;;  %v245_v61 = vsub.f32 %v2813_v20, %v2835_v45  ;;  %2236 = vpow2.f32 %v236_v44  ;;  %v244_v1 = vsub.f32 %v2815_v24, %v2843_v48 }
  0xc4   :  { %v2849_v54 = vpop.permute.xlu1 %301  ;;  %v2851_v57 = vpop.permute.xlu0 %296  ;;  %v240_v50 = vmul.f32 1.442695, %v233_v51  ;;  %v264_v62 = vmul.f32 1.442695, %v257_v52  ;;  %v238_v0 = vmul.f32 1.442695, %v232_v59  ;;  %2238 = vpow2.f32 %v234_v47 }
  0xc5   :  { %947 = vperm.xlu1 %2231, %v2118_v16   ;;  %942 = vperm.xlu0 %2230, %v2117_v46   ;;  %v262_v2 = vmul.f32 1.442695, %v256_v60  ;;  %v252_v9 = vmul.f32 1.442695, %v245_v61  ;;  %v250_v12 = vmul.f32 1.442695, %v244_v1 }
  0xc6   :  { %2240 = vpow2.f32 %v264_v62 }
  0xc7   :  { %2242 = vpow2.f32 %v262_v2 }
  0xc8   :  { %v321_v5 = vpop.permute.xlu1 %320  ;;  %v316_v6 = vpop.permute.xlu0 %315  ;;  %2244 = vpow2.f32 %v240_v50 }
  0xc9   :  { %970 = vperm.xlu1 %2231, %v2120_v63   ;;  %965 = vperm.xlu0 %2230, %v2119_v56   ;;  %2246 = vpow2.f32 %v238_v0  ;;  %v2131_v63 = vld [vmem:[%s3581_s2 + $0xd0] sm:$0xff] }
  0xca   :  { %2248 = vpow2.f32 %v248_v4 }
  0xcb   :  { %2250 = vpow2.f32 %v246_v8  ;;  %v2873_v13 = vpop.eup %2232  ;;  %v2133_v8 = vld [vmem:[%s3580_s1 + $0xe0] sm:$0xff] }
  0xcc   :  { %v331_v3 = vpop.permute.xlu1 %330  ;;  %v326_v7 = vpop.permute.xlu0 %325  ;;  %2252 = vpow2.f32 %v252_v9 }
  0xcd   :  { %980 = vperm.xlu1 %2231, %v2122_v10   ;;  %975 = vperm.xlu0 %2230, %v2121_v11   ;;  %v2881_v20 = vpop.eup %2234  ;;  %2254 = vpow2.f32 %v250_v12  ;;  %v2136_v11 = vld [vmem:[%s3580_s1 + $0xf8] sm:$0xff]  ;;  %v2135_v12 = vld [vmem:[%s3580_s1 + $0xf0] sm:$0xff] }
  0xce   :  { %v2883_v21 = vpop.eup %2236 }
  0xcf   :  { %v2885_v24 = vpop.eup %2238  ;;  %v305_v35 = vmul.f32 %v2883_v21, %v2830_v39  ;;  %v2129_v39 = vld [vmem:[%s3581_s2 + $0xc0] sm:$0xff] }
  0xd0   :  { %v354_v22 = vpop.permute.xlu1 %353  ;;  %v349_v23 = vpop.permute.xlu0 %348  ;;  %v304_v15 = vmul.f32 %v2885_v24, %v2832_v40 }
  0xd1   :  { %1041 = vperm.xlu1 %2231, %v2126_v14   ;;  %1036 = vperm.xlu0 %2230, %v2125_v19   ;;  %v2887_v25 = vpop.eup %2240  ;;  %v367_v43 = vmul.f32 %v2873_v13, %v354_v22  ;;  %v366_v46 = vmul.f32 %v2881_v20, %v349_v23  ;;  %v2138_v23 = vld [vmem:[%s3581_s2 + $0xe8] sm:$0xff] }
  0xd2   :  { %v2895_v28 = vpop.eup %2242 }
  0xd3   :  { %v2897_v29 = vpop.eup %2244 }
  0xd4   :  { %v364_v30 = vpop.permute.xlu1 %363  ;;  %v359_v32 = vpop.permute.xlu0 %358  ;;  %v307_v41 = vmul.f32 %v2897_v29, %v2849_v54 }
  0xd5   :  { %v2899_v33 = vpop.eup %2246  ;;  %1051 = vperm.xlu1 %2231, %v2128_v26   ;;  %1046 = vperm.xlu0 %2230, %v2127_v27   ;;  %v369_v54 = vmul.f32 %v2887_v25, %v364_v30  ;;  %v368_v50 = vmul.f32 %v2895_v28, %v359_v32  ;;  %v268_v27 = vsel %vm266_vm0, %v2809_v17, 0.0  ;;  %v267_v30 = vsel %vm266_vm0, %v2811_v18, 0.0 }
  0xd6   :  { %v2249_v36 = vpop.eup %2248  ;;  %v306_v16 = vmul.f32 %v2899_v33, %v2851_v57  ;;  %v2132_v57 = vld [vmem:[%s3581_s2 + $0xd8] sm:$0xff] }
  0xd7   :  { %v2251_v38 = vpop.eup %2250  ;;  %v334_v42 = vmul.f32 %v2249_v36, %v321_v5 }
  0xd8   :  { %v2253_v44 = vpop.eup %2252  ;;  %v333_v40 = vmul.f32 %v2251_v38, %v316_v6  ;;  %v412_v47 = vpop.permute.xlu1 %411  ;;  %v2134_v6 = vld [vmem:[%s3580_s1 + $0xe8] sm:$0xff] }
  0xd9   :  { %v407_v49 = vpop.permute.xlu0 %406  ;;  %v2255_v51 = vpop.eup %2254  ;;  %v338_v52 = vadd.f32 %v334_v42, %v305_v35  ;;  %v336_v58 = vmul.f32 %v2253_v44, %v331_v3  ;;  %1074 = vperm.xlu1 %2231, %v2130_v37   ;;  %1069 = vperm.xlu0 %2230, %v2129_v39   ;;  %v425_v22 = vmul.f32 %v2883_v21, %v412_v47  ;;  %v2137_v35 = vld [vmem:[%s3581_s2 + $0xe0] sm:$0xff] }
  0xda   :  { %v337_v59 = vadd.f32 %v333_v40, %v304_v15  ;;  %v335_v60 = vmul.f32 %v2255_v51, %v326_v7  ;;  %v424_v32 = vmul.f32 %v2885_v24, %v407_v49  ;;  %v270_v40 = vsel %vm266_vm0, %v2843_v48, 0.0  ;;  %v2140_v49 = vld [vmem:[%s3581_s2 + $0xf8] sm:$0xff]  ;;  %v2139_v48 = vld [vmem:[%s3581_s2 + $0xf0] sm:$0xff] }
  0xdb   :  { %v340_v61 = vadd.f32 %v336_v58, %v307_v41  ;;  %v371_v62 = vadd.f32 %v367_v43, %v338_v52 }
  0xdc   :  { %v339_v56 = vadd.f32 %v335_v60, %v306_v16  ;;  %v370_v0 = vadd.f32 %v366_v46, %v337_v59  ;;  %v422_v1 = vpop.permute.xlu1 %421 }
  0xdd   :  { %v417_v2 = vpop.permute.xlu0 %416  ;;  %2256 = vlog2.f32 %v371_v62  ;;  %v373_v4 = vadd.f32 %v369_v54, %v340_v61  ;;  %1084 = vperm.xlu1 %2231, %v2132_v57   ;;  %1079 = vperm.xlu0 %2230, %v2131_v63   ;;  %v427_v47 = vmul.f32 %v2897_v29, %v422_v1  ;;  %v269_v62 = vadd.f32 %v268_v27, %v267_v30 }
  0xde   :  { %2258 = vlog2.f32 %v370_v0  ;;  %v372_v5 = vadd.f32 %v368_v50, %v339_v56  ;;  %v2142_v56 = vld [vmem:[%s3580_s1 + $0x108] sm:$0xff] }
  0xdf   :  { %2260 = vlog2.f32 %v373_v4  ;;  %v271_v4 = vadd.f32 %v270_v40, %v269_v62  ;;  %v2150_v40 = vld [vmem:[%s3582_s3 + $0x188] sm:$0xff]  ;;  %v2153_v62 = vld [vmem:[%s3582_s3 + $0x1a0] sm:$0xff] }
  0xe0   :  { %2262 = vlog2.f32 %v372_v5  ;;  %v441_v9 = vpop.permute.xlu1 %440 }
  0xe1   :  { %v436_v10 = vpop.permute.xlu0 %435  ;;  %1103 = vperm.xlu1 %2231, %v2134_v6   ;;  %1098 = vperm.xlu0 %2230, %v2133_v8   ;;  %v454_v3 = vmul.f32 %v2249_v36, %v441_v9  ;;  %v2144_v8 = vld [vmem:[%s3580_s1 + $0x118] sm:$0xff]  ;;  %v272_v9 = vsel %vm266_vm0, %v2835_v45, 0.0  ;;  %v2145_v45 = vld [vmem:[%s3581_s2 + $0x100] sm:$0xff] }
  0xe2   :  { %v453_v19 = vmul.f32 %v2251_v38, %v436_v10  ;;  %v2143_v10 = vld [vmem:[%s3580_s1 + $0x110] sm:$0xff] }
  0xe3   :  { %v458_v15 = vadd.f32 %v454_v3, %v425_v22 }
  0xe4   :  { %v451_v7 = vpop.permute.xlu1 %450  ;;  %v457_v16 = vadd.f32 %v453_v19, %v424_v32 }
  0xe5   :  { %v446_v14 = vpop.permute.xlu0 %445  ;;  %1113 = vperm.xlu1 %2231, %v2136_v11   ;;  %1108 = vperm.xlu0 %2230, %v2135_v12   ;;  %v456_v37 = vmul.f32 %v2253_v44, %v451_v7  ;;  %v426_v44 = vmul.f32 %v2899_v33, %v417_v2  ;;  %v2141_v2 = vld [vmem:[%s3580_s1 + $0x100] sm:$0xff]  ;;  %v273_v11 = vadd.f32 %v272_v9, %v271_v4 }
  0xe6   :  { %v455_v38 = vmul.f32 %v2255_v51, %v446_v14  ;;  %v2146_v14 = vld [vmem:[%s3581_s2 + $0x108] sm:$0xff] }
  0xe7   :  { %v2257_v26 = vpop.eup %2256  ;;  %v460_v59 = vadd.f32 %v456_v37, %v427_v47  ;;  %v2149_v47 = vld [vmem:[%s3582_s3 + $0x180] sm:$0xff] }
  0xe8   :  { %v2259_v36 = vpop.eup %2258  ;;  %v377_v21 = vmul.f32 0.6931472, %v2257_v26  ;;  %v474_v41 = vpop.permute.xlu1 %473  ;;  %v459_v29 = vadd.f32 %v455_v38, %v426_v44  ;;  %v2147_v38 = vld [vmem:[%s3581_s2 + $0x110] sm:$0xff] }
  0xe9   :  { %v469_v42 = vpop.permute.xlu0 %468  ;;  %v2261_v43 = vpop.eup %2260  ;;  %v375_v39 = vmul.f32 0.6931472, %v2259_v36  ;;  %v487_v17 = vmul.f32 %v2873_v13, %v474_v41  ;;  %1136 = vperm.xlu1 %2231, %v2138_v23   ;;  %1131 = vperm.xlu0 %2230, %v2137_v35   ;;  %v274_v23 = vrot.slane %v273_v11, 4  ;;  %v2148_v36 = vld [vmem:[%s3581_s2 + $0x118] sm:$0xff] }
  0xea   :  { %v486_v18 = vmul.f32 %v2881_v20, %v469_v42  ;;  %v2263_v24 = vpop.eup %2262  ;;  %v383_v46 = vsel %vm266_vm0, %v377_v21, 0.0  ;;  %v381_v54 = vmul.f32 0.6931472, %v2261_v43 }
  0xeb   :  { %v382_v13 = vsel %vm266_vm0, %v375_v39, 0.0  ;;  %v379_v51 = vmul.f32 0.6931472, %v2263_v24  ;;  %v491_v20 = vadd.f32 %v487_v17, %v458_v15  ;;  %v275_v42 = vadd.f32 %v274_v23, %v273_v11 }
  0xec   :  { %v490_v52 = vadd.f32 %v486_v18, %v457_v16  ;;  %v384_v58 = vadd.f32 %v383_v46, %v382_v13  ;;  %v484_v60 = vpop.permute.xlu1 %483 }
  0xed   :  { %v479_v33 = vpop.permute.xlu0 %478  ;;  %v385_v50 = vsel %vm266_vm0, %v379_v51, 0.0  ;;  %2264 = vlog2.f32 %v491_v20  ;;  %v489_v57 = vmul.f32 %v2887_v25, %v484_v60  ;;  %1146 = vperm.xlu1 %2231, %v2140_v49   ;;  %1141 = vperm.xlu0 %2230, %v2139_v48   ;;  %v276_v44 = vrot.slane %v275_v42, 2 }
  0xee   :  { %v488_v61 = vmul.f32 %v2895_v28, %v479_v33  ;;  %v386_v63 = vadd.f32 %v385_v50, %v384_v58  ;;  %2266 = vlog2.f32 %v490_v52  ;;  %v387_v28 = vsel %vm266_vm0, %v381_v54, 0.0  ;;  %v2152_v58 = vld [vmem:[%s3582_s3 + $0x198] sm:$0xff]  ;;  %v2151_v54 = vld [vmem:[%s3582_s3 + $0x190] sm:$0xff] }
  0xef   :  { %v493_v0 = vadd.f32 %v489_v57, %v460_v59  ;;  %v277_v59 = vadd.f32 %v276_v44, %v275_v42 }
  0xf0   :  { %v492_v1 = vadd.f32 %v488_v61, %v459_v29  ;;  %v2972_v5 = vpop.permute.xlu1 %545  ;;  %v388_v6 = vadd.f32 %v387_v28, %v386_v63  ;;  %v2154_v61 = vld [vmem:[%s3582_s3 + $0x1a8] sm:$0xff]  ;;  %v2156_v28 = vld [vmem:[%s3582_s3 + $0x1b8] sm:$0xff] }
  0xf1   :  { %v2974_v25 = vpop.permute.xlu0 %540  ;;  %2268 = vlog2.f32 %v493_v0  ;;  %1165 = vperm.xlu1 %2231, %v2142_v56   ;;  %1160 = vperm.xlu0 %2230, %v2141_v2  }
  0xf2   :  { %2270 = vlog2.f32 %v492_v1  ;;  %v389_v7 = vrot.slane %v388_v6, 4  ;;  %v278_v1 = vrot.slane %v277_v59, 1 }
  0xf4   :  { %v2985_v12 = vpop.permute.xlu1 %555  ;;  %v390_v35 = vadd.f32 %v389_v7, %v388_v6  ;;  %v2155_v6 = vld [vmem:[%s3582_s3 + $0x1b0] sm:$0xff]  ;;  %v279_v11 = vadd.f32 %v278_v1, %v277_v59  ;;  %v2162_v59 = vld [vmem:[%s3582_s3 + $0x1e0] sm:$0xff] }
  0xf5   :  { %v2987_v3 = vpop.permute.xlu0 %550  ;;  %1175 = vperm.xlu1 %2231, %v2144_v8   ;;  %1170 = vperm.xlu0 %2230, %v2143_v10  }
  0xf6   :  { %v391_v18 = vrot.slane %v390_v35, 2 }
  0xf7   :  { %v2265_v19 = vpop.eup %2264 }
  0xf8   :  { %v2267_v22 = vpop.eup %2266  ;;  %v497_v26 = vmul.f32 0.6931472, %v2265_v19  ;;  %v2995_v27 = vpop.permute.xlu1 %578  ;;  %v392_v52 = vadd.f32 %v391_v18, %v390_v35  ;;  %v2158_v19 = vld [vmem:[%s3582_s3 + $0x1c8] sm:$0xff]  ;;  %v517_v35 = vstv %s3033_s24 }
  0xf9   :  { %v2997_v30 = vpop.permute.xlu0 %573  ;;  %v495_v32 = vmul.f32 0.6931472, %v2267_v22  ;;  %1198 = vperm.xlu1 %2231, %v2146_v14   ;;  %1193 = vperm.xlu0 %2230, %v2145_v45   ;;  %v559_v22 = vsub.f32 %v2747_v31, %v2972_v5  ;;  %v2160_v5 = vld [vmem:[%s3582_s3 + $0x1d8] sm:$0xff] }
  0xfa   :  { %v503_v15 = vsel %vm266_vm0, %v497_v26, 0.0  ;;  %v393_v50 = vrot.slane %v392_v52, 1  ;;  %v2157_v26 = vld [vmem:[%s3582_s3 + $0x1c0] sm:$0xff] }
  0xfb   :  { %v2269_v21 = vpop.eup %2268  ;;  %v502_v37 = vsel %vm266_vm0, %v495_v32, 0.0  ;;  %v397_v32 = vstv %s3031_s23 }
  0xfc   :  { %v2271_v41 = vpop.eup %2270  ;;  %v3007_v43 = vpop.permute.xlu1 %588  ;;  %v501_v16 = vmul.f32 0.6931472, %v2269_v21  ;;  %v504_v24 = vadd.f32 %v503_v15, %v502_v37  ;;  %v394_v2 = vadd.f32 %v393_v50, %v392_v52  ;;  %v558_v37 = vsub.f32 %v2752_v34, %v2974_v25 }
  0xfd   :  { %v3009_v39 = vpop.permute.xlu0 %583  ;;  %v499_v17 = vmul.f32 0.6931472, %v2271_v41  ;;  %1208 = vperm.xlu1 %2231, %v2148_v36   ;;  %1203 = vperm.xlu0 %2230, %v2147_v38   ;;  %v561_v25 = vsub.f32 %v2782_v55, %v2985_v12  ;;  %v2163_v12 = vld [vmem:[%s3582_s3 + $0x1e8] sm:$0xff] }
  0xfe   :  { %v507_v20 = vsel %vm266_vm0, %v501_v16, 0.0  ;;  %v395_v45 = vadd.f32 %v394_v2, %v279_v11  ;;  %v563_v16 = vmul.f32 %v559_v22, %v559_v22  ;;  %v2165_v2 = vld [vmem:[%s3582_s3 + $0x1f8] sm:$0xff] }
  0xff   :  { %v505_v46 = vsel %vm266_vm0, %v499_v17, 0.0 }
 0x100   :  { %v506_v49 = vadd.f32 %v505_v46, %v504_v24  ;;  %v608_v13 = vpop.permute.xlu1 %607  ;;  %v398_v41 = vadd.f32 %v397_v32, %v395_v45  ;;  %v560_v46 = vsub.f32 %v2777_v53, %v2987_v3 }
 0x101   :  { %v603_v51 = vpop.permute.xlu0 %602  ;;  %1284 = vperm.xlu1 %2231, %v2150_v40   ;;  %1279 = vperm.xlu0 %2230, %v2149_v47   ;;  %v621_v14 = vsub.f32 %v2747_v31, %v608_v13  ;;  %v2159_v40 = vld [vmem:[%s3582_s3 + $0x1d0] sm:$0xff] }
 0x102   :  { %v508_v48 = vadd.f32 %v507_v20, %v506_v49  ;;  %v620_v23 = vsub.f32 %v2752_v34, %v603_v51  ;;  %v562_v51 = vmul.f32 %v558_v37, %v558_v37 }
 0x103   :  { %v625_v38 = vmul.f32 %v621_v14, %v621_v14 }
 0x104   :  { %v509_v29 = vrot.slane %v508_v48, 4  ;;  %v618_v60 = vpop.permute.xlu1 %617  ;;  %v624_v17 = vmul.f32 %v620_v23, %v620_v23 }
 0x105   :  { %v613_v33 = vpop.permute.xlu0 %612  ;;  %1294 = vperm.xlu1 %2231, %v2152_v58   ;;  %1289 = vperm.xlu0 %2230, %v2151_v54   ;;  %v623_v20 = vsub.f32 %v2782_v55, %v618_v60  ;;  %v564_v60 = vmul.f32 %v560_v46, %v560_v46 }
 0x106   :  { %v510_v57 = vadd.f32 %v509_v29, %v508_v48  ;;  %v622_v52 = vsub.f32 %v2777_v53, %v613_v33  ;;  %v591_v48 = vmul.f32 %v2997_v30, %v562_v51  ;;  %v565_v29 = vmul.f32 %v561_v25, %v561_v25 }
 0x108   :  { %v511_v63 = vrot.slane %v510_v57, 2  ;;  %v641_v56 = vpop.permute.xlu1 %640 }
 0x109   :  { %v636_v0 = vpop.permute.xlu0 %635  ;;  %1313 = vperm.xlu1 %2231, %v2154_v61   ;;  %1308 = vperm.xlu0 %2230, %v2153_v62   ;;  %v3071_v47 = vmul.f32 %v641_v56, %v625_v38  ;;  %v627_v56 = vmul.f32 %v623_v20, %v623_v20 }
 0x10a   :  { %v512_v4 = vadd.f32 %v511_v63, %v510_v57 }
 0x10c   :  { %v513_v8 = vrot.slane %v512_v4, 1  ;;  %v3041_v9 = vpop.permute.xlu1 %650 }
 0x10d   :  { %v3043_v10 = vpop.permute.xlu0 %645  ;;  %1323 = vperm.xlu1 %2231, %v2156_v28   ;;  %1318 = vperm.xlu0 %2230, %v2155_v6  }
 0x10e   :  { %v514_v7 = vadd.f32 %v513_v8, %v512_v4 }
 0x110   :  { %v670_v36 = vpop.permute.xlu1 %669  ;;  %v515_v15 = vadd.f32 %v514_v7, %v279_v11  ;;  %v594_v11 = vmul.f32 %v3007_v43, %v565_v29  ;;  %v593_v7 = vmul.f32 %v3009_v39, %v564_v60 }
 0x111   :  { %v665_v21 = vpop.permute.xlu0 %664  ;;  %1346 = vperm.xlu1 %2231, %v2158_v19   ;;  %1341 = vperm.xlu0 %2230, %v2157_v26   ;;  %v683_v18 = vsub.f32 %v2747_v31, %v670_v36  ;;  %v3075_v31 = vmul.f32 %v636_v0, %v624_v17  ;;  %v626_v0 = vmul.f32 %v622_v52, %v622_v52 }
 0x112   :  { %v518_v42 = vadd.f32 %v517_v35, %v515_v15  ;;  %v682_v24 = vsub.f32 %v2752_v34, %v665_v21  ;;  %v592_v34 = vmul.f32 %v2995_v27, %v563_v16  ;;  %v2166_v15 = vld [vmem:[%s3582_s3 + $0x200] sm:$0xff] }
 0x113   :  { %v687_v58 = vmul.f32 %v683_v18, %v683_v18  ;;  %v719_v61 = vmax.f32 %v591_v48, %v3075_v31  ;;  %v3109_v14 = vmul.f32 %v3043_v10, %v626_v0  ;;  %v2167_v10 = vld [vmem:[%s3582_s3 + $0x208] sm:$0xff] }
 0x114   :  { %v680_v44 = vpop.permute.xlu1 %679  ;;  %v3073_v13 = vmax.f32 %v398_v41, %v518_v42  ;;  %v686_v54 = vmul.f32 %v682_v24, %v682_v24  ;;  %v720_v33 = vmax.f32 %v592_v34, %v3071_v47 }
 0x115   :  { %v675_v49 = vpop.permute.xlu0 %674  ;;  %1356 = vperm.xlu1 %2231, %v2160_v5   ;;  %1351 = vperm.xlu0 %2230, %v2159_v40   ;;  %v685_v62 = vsub.f32 %v2782_v55, %v680_v44  ;;  %v2164_v55 = vld [vmem:[%s3582_s3 + $0x1f0] sm:$0xff]  ;;  %v721_v17 = vmax.f32 %v593_v7, %v3109_v14  ;;  %v2169_v40 = vld [vmem:[%s3582_s3 + $0x218] sm:$0xff] }
 0x116   :  { %v520_v3 = vsub.f32 %v398_v41, %v3073_v13  ;;  %v523_v27 = vsub.f32 %v518_v42, %v3073_v13  ;;  %v684_v1 = vsub.f32 %v2777_v53, %v675_v49  ;;  %v3106_v53 = vmul.f32 %v3041_v9, %v627_v56  ;;  %v2168_v49 = vld [vmem:[%s3582_s3 + $0x210] sm:$0xff] }
 0x117   :  { %v689_v22 = vmul.f32 %v685_v62, %v685_v62 }
 0x118   :  { %v703_v50 = vpop.permute.xlu1 %702  ;;  %v521_v4 = vmul.f32 1.442695, %v520_v3  ;;  %v524_v8 = vmul.f32 1.442695, %v523_v27  ;;  %v688_v43 = vmul.f32 %v684_v1, %v684_v1  ;;  %v722_v37 = vmax.f32 %v594_v11, %v3106_v53 }
 0x119   :  { %v698_v57 = vpop.permute.xlu0 %697  ;;  %v716_v63 = vmul.f32 %v703_v50, %v687_v58  ;;  %1404 = vperm.xlu1 %2231, %v2163_v12   ;;  %1399 = vperm.xlu0 %2230, %v2162_v59  }
 0x11a   :  { %v715_v30 = vmul.f32 %v698_v57, %v686_v54  ;;  %2272 = vpow2.f32 %v521_v4  ;;  %v2170_v57 = vld [vmem:[%s3582_s3 + $0x220] sm:$0xff]  ;;  %v2173_v4 = vld [vmem:[%s3582_s3 + $0x238] sm:$0xff] }
 0x11b   :  { %v3096_v28 = vmax.f32 %v720_v33, %v716_v63  ;;  %2274 = vpow2.f32 %v524_v8 }
 0x11c   :  { %v3098_v6 = vmax.f32 %v719_v61, %v715_v30  ;;  %v713_v19 = vpop.permute.xlu1 %712 }
 0x11d   :  { %v708_v45 = vpop.permute.xlu0 %707  ;;  %v728_v23 = vsub.f32 %v592_v34, %v3096_v28  ;;  %v752_v26 = vsub.f32 %v716_v63, %v3096_v28  ;;  %v764_v32 = vsel %vm266_vm0, %v3096_v28, 0.0  ;;  %1414 = vperm.xlu1 %2231, %v2165_v2   ;;  %1409 = vperm.xlu0 %2230, %v2164_v55   ;;  %v718_v41 = vmul.f32 %v713_v19, %v689_v22  ;;  %v2177_v19 = vld [vmem:[%s3580_s1 + $0x128] sm:$0xff] }
 0x11e   :  { %v751_v39 = vsub.f32 %v715_v30, %v3098_v6  ;;  %v763_v9 = vsel %vm266_vm0, %v3098_v6, 0.0  ;;  %v727_v36 = vsub.f32 %v591_v48, %v3098_v6  ;;  %v717_v18 = vmul.f32 %v708_v45, %v688_v43  ;;  %v2176_v45 = vld [vmem:[%s3580_s1 + $0x120] sm:$0xff]  ;;  %v2179_v43 = vld [vmem:[%s3580_s1 + $0x138] sm:$0xff] }
 0x11f   :  { %v757_v35 = vmul.f32 1.442695, %v752_v26  ;;  %v765_v21 = vadd.f32 %v764_v32, %v763_v9  ;;  %v733_v38 = vmul.f32 1.442695, %v728_v23  ;;  %v726_v24 = vmax.f32 %v722_v37, %v718_v41  ;;  %v2178_v9 = vld [vmem:[%s3580_s1 + $0x130] sm:$0xff] }
 0x120   :  { %v755_v5 = vmul.f32 1.442695, %v751_v39  ;;  %v3126_v42 = vpop.permute.xlu1 %788  ;;  %v740_v25 = vsub.f32 %v3071_v47, %v3096_v28  ;;  %v731_v46 = vmul.f32 1.442695, %v727_v36  ;;  %v725_v44 = vmax.f32 %v721_v17, %v717_v18 }
 0x121   :  { %v3128_v16 = vpop.permute.xlu0 %783  ;;  %1433 = vperm.xlu1 %2231, %v2167_v10   ;;  %2276 = vpow2.f32 %v757_v35  ;;  %1428 = vperm.xlu0 %2230, %v2166_v15   ;;  %v739_v51 = vsub.f32 %v3075_v31, %v3098_v6  ;;  %v730_v34 = vsub.f32 %v594_v11, %v726_v24  ;;  %v754_v20 = vsub.f32 %v718_v41, %v726_v24  ;;  %v2171_v31 = vld [vmem:[%s3582_s3 + $0x228] sm:$0xff]  ;;  %v2172_v6 = vld [vmem:[%s3582_s3 + $0x230] sm:$0xff] }
 0x122   :  { %2278 = vpow2.f32 %v755_v5  ;;  %v742_v3 = vsub.f32 %v3106_v53, %v726_v24  ;;  %v729_v47 = vsub.f32 %v593_v7, %v725_v44  ;;  %v753_v48 = vsub.f32 %v717_v18, %v725_v44  ;;  %v2181_v5 = vld [vmem:[%s3581_s2 + $0x128] sm:$0xff] }
 0x123   :  { %2280 = vpow2.f32 %v733_v38  ;;  %v766_v58 = vsel %vm266_vm0, %v725_v44, 0.0  ;;  %v737_v54 = vmul.f32 1.442695, %v730_v34  ;;  %v761_v59 = vmul.f32 1.442695, %v754_v20 }
 0x124   :  { %v3141_v52 = vpop.permute.xlu1 %798  ;;  %v768_v27 = vsel %vm266_vm0, %v726_v24, 0.0  ;;  %v767_v29 = vadd.f32 %v766_v58, %v765_v21  ;;  %v735_v60 = vmul.f32 1.442695, %v729_v47  ;;  %v741_v33 = vsub.f32 %v3109_v14, %v725_v44  ;;  %v2273_v61 = vpop.eup %2272 }
 0x125   :  { %v3143_v12 = vpop.permute.xlu0 %793  ;;  %1443 = vperm.xlu1 %2231, %v2169_v40   ;;  %1438 = vperm.xlu0 %2230, %v2168_v49   ;;  %v759_v50 = vmul.f32 1.442695, %v753_v48  ;;  %2282 = vpow2.f32 %v731_v46  ;;  %v745_v62 = vmul.f32 1.442695, %v740_v25  ;;  %v2275_v0 = vpop.eup %2274  ;;  %v743_v1 = vmul.f32 1.442695, %v739_v51 }
 0x126   :  { %2284 = vpow2.f32 %v761_v59  ;;  %v3155_v63 = vadd.f32 %v768_v27, %v767_v29  ;;  %v749_v2 = vmul.f32 1.442695, %v742_v3  ;;  %v747_v28 = vmul.f32 1.442695, %v741_v33  ;;  %v2184_v27 = vld [vmem:[%s3580_s1 + $0x140] sm:$0xff] }
 0x127   :  { %2286 = vpow2.f32 %v759_v50  ;;  %v526_v7 = vadd.f32 %v2275_v0, %v2273_v61 }
 0x128   :  { %v818_v30 = vpop.permute.xlu1 %817  ;;  %2288 = vpow2.f32 %v737_v54 }
 0x129   :  { %v813_v56 = vpop.permute.xlu0 %812  ;;  %1466 = vperm.xlu1 %2231, %v2171_v31   ;;  %1461 = vperm.xlu0 %2230, %v2170_v57   ;;  %2290 = vpow2.f32 %v735_v60 }
 0x12a   :  { %2292 = vpow2.f32 %v745_v62  ;;  %v2192_v62 = vld [vmem:[%s3580_s1 + $0x160] sm:$0xff] }
 0x12b   :  { %v3163_v55 = vpop.eup %2276  ;;  %2294 = vpow2.f32 %v743_v1 }
 0x12c   :  { %v828_v8 = vpop.permute.xlu1 %827  ;;  %v3165_v53 = vpop.eup %2278  ;;  %2296 = vpow2.f32 %v749_v2 }
 0x12d   :  { %v823_v11 = vpop.permute.xlu0 %822  ;;  %1476 = vperm.xlu1 %2231, %v2173_v4   ;;  %v3167_v14 = vpop.eup %2280  ;;  %1471 = vperm.xlu0 %2230, %v2172_v6   ;;  %2298 = vpow2.f32 %v747_v28  ;;  %v2187_v4 = vld [vmem:[%s3580_s1 + $0x158] sm:$0xff]  ;;  %v2193_v28 = vld [vmem:[%s3580_s1 + $0x168] sm:$0xff] }
 0x12e   :  { %2300 = vlog2.f32 %v526_v7  ;;  %v802_v15 = vmul.f32 %v3167_v14, %v3126_v42  ;;  %v2180_v42 = vld [vmem:[%s3581_s2 + $0x120] sm:$0xff] }
 0x12f   :  { %v3175_v26 = vpop.eup %2282 }
 0x130   :  { %v851_v22 = vpop.permute.xlu1 %850  ;;  %v3177_v32 = vpop.eup %2284  ;;  %v801_v38 = vmul.f32 %v3175_v26, %v3128_v16 }
 0x131   :  { %v846_v23 = vpop.permute.xlu0 %845  ;;  %1537 = vperm.xlu1 %2231, %v2177_v19   ;;  %1532 = vperm.xlu0 %2230, %v2176_v45   ;;  %v3182_v39 = vpop.eup %2286  ;;  %v864_v24 = vmul.f32 %v3163_v55, %v851_v22  ;;  %v2189_v45 = vld [vmem:[%s3581_s2 + $0x148] sm:$0xff] }
 0x132   :  { %v3187_v10 = vpop.eup %2288  ;;  %v863_v46 = vmul.f32 %v3165_v53, %v846_v23 }
 0x133   :  { %v3189_v21 = vpop.eup %2290  ;;  %v804_v17 = vmul.f32 %v3187_v10, %v3141_v52 }
 0x134   :  { %v861_v35 = vpop.permute.xlu1 %860  ;;  %v2293_v37 = vpop.eup %2292  ;;  %v803_v16 = vmul.f32 %v3189_v21, %v3143_v12  ;;  %v2185_v12 = vld [vmem:[%s3580_s1 + $0x148] sm:$0xff] }
 0x135   :  { %v856_v36 = vpop.permute.xlu0 %855  ;;  %1547 = vperm.xlu1 %2231, %v2179_v43   ;;  %1542 = vperm.xlu0 %2230, %v2178_v9   ;;  %v2295_v41 = vpop.eup %2294  ;;  %v831_v18 = vmul.f32 %v2293_v37, %v818_v30  ;;  %v866_v52 = vmul.f32 %v3177_v32, %v861_v35  ;;  %v2188_v9 = vld [vmem:[%s3581_s2 + $0x140] sm:$0xff] }
 0x136   :  { %v2297_v40 = vpop.eup %2296  ;;  %v830_v25 = vmul.f32 %v2295_v41, %v813_v56  ;;  %v865_v58 = vmul.f32 %v3182_v39, %v856_v36  ;;  %v2186_v56 = vld [vmem:[%s3580_s1 + $0x150] sm:$0xff] }
 0x137   :  { %v2299_v51 = vpop.eup %2298  ;;  %v835_v34 = vadd.f32 %v831_v18, %v802_v15  ;;  %v833_v20 = vmul.f32 %v2297_v40, %v828_v8 }
 0x138   :  { %v909_v44 = vpop.permute.xlu1 %908  ;;  %v2301_v3 = vpop.eup %2300  ;;  %v834_v47 = vadd.f32 %v830_v25, %v801_v38  ;;  %v832_v48 = vmul.f32 %v2299_v51, %v823_v11 }
 0x139   :  { %v904_v49 = vpop.permute.xlu0 %903  ;;  %1570 = vperm.xlu1 %2231, %v2181_v5   ;;  %1565 = vperm.xlu0 %2230, %v2180_v42   ;;  %v837_v54 = vadd.f32 %v833_v20, %v804_v17  ;;  %v868_v59 = vadd.f32 %v864_v24, %v835_v34  ;;  %v528_v29 = vmul.f32 0.6931472, %v2301_v3  ;;  %v922_v19 = vmul.f32 %v3167_v14, %v909_v44 }
 0x13a   :  { %v836_v31 = vadd.f32 %v832_v48, %v803_v16  ;;  %v867_v60 = vadd.f32 %v863_v46, %v834_v47  ;;  %v921_v43 = vmul.f32 %v3175_v26, %v904_v49 }
 0x13b   :  { %2302 = vlog2.f32 %v868_v59  ;;  %v870_v57 = vadd.f32 %v866_v52, %v837_v54  ;;  %v529_v30 = vadd.f32 %v528_v29, %v3073_v13  ;;  %v770_v13 = vrot.slane %v3155_v63, 4 }
 0x13c   :  { %v919_v33 = vpop.permute.xlu1 %918  ;;  %2304 = vlog2.f32 %v867_v60  ;;  %v869_v61 = vadd.f32 %v865_v58, %v836_v31  ;;  %v2190_v31 = vld [vmem:[%s3581_s2 + $0x150] sm:$0xff] }
 0x13d   :  { %v914_v50 = vpop.permute.xlu0 %913  ;;  %1599 = vperm.xlu1 %2231, %v2185_v12   ;;  %1594 = vperm.xlu0 %2230, %v2184_v27   ;;  %2306 = vlog2.f32 %v870_v57  ;;  %v2073_v2 = vadd.f32 -29.406033, %v529_v30  ;;  %v771_v23 = vadd.f32 %v770_v13, %v3155_v63  ;;  %v924_v25 = vmul.f32 %v3187_v10, %v919_v33  ;;  %v2195_v12 = vld [vmem:[%s3580_s1 + $0x178] sm:$0xff]  ;;  %v2196_v30 = vld [vmem:[%s3581_s2 + $0x160] sm:$0xff] }
 0x13e   :  { %2308 = vlog2.f32 %v869_v61  ;;  %v923_v46 = vmul.f32 %v3189_v21, %v914_v50  ;;  %v2197_v50 = vld [vmem:[%s3581_s2 + $0x168] sm:$0xff] }
 0x13f   :  { %532 = vst.msk [vmem:[#allocation5] sm:$0x1] %vm531_vm1, %v2073_v2  ;;  %v772_v54 = vrot.slane %v771_v23, 2  ;;  %v3267_v61 = vld [vmem:[%s3579_s0 + $0x8] sm:$0xff] }
 0x140   :  { %v938_v0 = vpop.permute.xlu1 %937 }
 0x141   :  { %v933_v1 = vpop.permute.xlu0 %932  ;;  %1656 = vperm.xlu1 %2231, %v2192_v62   ;;  %1604 = vperm.xlu0 %2230, %v2186_v56   ;;  %v951_v6 = vmul.f32 %v2293_v37, %v938_v0  ;;  %v773_v57 = vadd.f32 %v772_v54, %v771_v23  ;;  %v3276_v0 = vld [vmem:[%s3579_s0] sm:$0xff] }
 0x142   :  { %v950_v7 = vmul.f32 %v2295_v41, %v933_v1 }
 0x143   :  { %v955_v15 = vadd.f32 %v951_v6, %v922_v19  ;;  %v2183_v19 = vld [vmem:[%s3581_s2 + $0x138] sm:$0xff] }
 0x144   :  { %v948_v8 = vpop.permute.xlu1 %947  ;;  %v954_v18 = vadd.f32 %v950_v7, %v921_v43 }
 0x145   :  { %v943_v11 = vpop.permute.xlu0 %942  ;;  %1609 = vperm.xlu1 %2231, %v2187_v4   ;;  %1661 = vperm.xlu0 %2230, %v2193_v28   ;;  %v2303_v22 = vpop.eup %2302  ;;  %v953_v37 = vmul.f32 %v2297_v40, %v948_v8  ;;  %v2182_v40 = vld [vmem:[%s3581_s2 + $0x130] sm:$0xff]  ;;  %v2191_v28 = vld [vmem:[%s3581_s2 + $0x158] sm:$0xff] }
 0x146   :  { %v2305_v35 = vpop.eup %2304  ;;  %v874_v36 = vmul.f32 0.6931472, %v2303_v22  ;;  %v952_v38 = vmul.f32 %v2299_v51, %v943_v11  ;;  %v3285_v11 = vld [vmem:[%s3579_s0 + $0x18] sm:$0xff] }
 0x147   :  { %v2307_v41 = vpop.eup %2306  ;;  %v872_v17 = vmul.f32 0.6931472, %v2305_v35  ;;  %v957_v20 = vadd.f32 %v953_v37, %v924_v25  ;;  %v3294_v35 = vld [vmem:[%s3579_s0 + $0x10] sm:$0xff] }
 0x148   :  { %v971_v14 = vpop.permute.xlu1 %970  ;;  %v2309_v26 = vpop.eup %2308  ;;  %v880_v42 = vsel %vm266_vm0, %v874_v36, 0.0  ;;  %v878_v16 = vmul.f32 0.6931472, %v2307_v41  ;;  %v956_v52 = vadd.f32 %v952_v38, %v923_v46 }
 0x149   :  { %v966_v5 = vpop.permute.xlu0 %965  ;;  %v984_v24 = vmul.f32 %v3163_v55, %v971_v14  ;;  %1632 = vperm.xlu1 %2231, %v2189_v45   ;;  %1627 = vperm.xlu0 %2230, %v2188_v9   ;;  %v879_v44 = vsel %vm266_vm0, %v872_v17, 0.0  ;;  %v876_v49 = vmul.f32 0.6931472, %v2309_v26  ;;  %v774_v45 = vrot.slane %v773_v57, 1 }
 0x14a   :  { %v983_v63 = vmul.f32 %v3165_v53, %v966_v5  ;;  %v2194_v53 = vld [vmem:[%s3580_s1 + $0x170] sm:$0xff]  ;;  %v881_v34 = vadd.f32 %v880_v42, %v879_v44  ;;  %v884_v59 = vsel %vm266_vm0, %v878_v16, 0.0 }
 0x14b   :  { %v988_v55 = vadd.f32 %v984_v24, %v955_v15  ;;  %v882_v21 = vsel %vm266_vm0, %v876_v49, 0.0  ;;  %v2198_v42 = vld [vmem:[%s3581_s2 + $0x170] sm:$0xff]  ;;  %v3309_v49 = vadd.f32 %v774_v45, %v773_v57 }
 0x14c   :  { %v987_v51 = vadd.f32 %v983_v63, %v954_v18  ;;  %v981_v10 = vpop.permute.xlu1 %980  ;;  %v883_v58 = vadd.f32 %v882_v21, %v881_v34  ;;  %v2199_v18 = vld [vmem:[%s3581_s2 + $0x178] sm:$0xff]  ;;  %v2200_v21 = vld [vmem:[%s3582_s3 + $0x240] sm:$0xff] }
 0x14d   :  { %v976_v3 = vpop.permute.xlu0 %975  ;;  %2310 = vlog2.f32 %v988_v55  ;;  %v986_v47 = vmul.f32 %v3177_v32, %v981_v10  ;;  %1575 = vperm.xlu1 %2231, %v2182_v40   ;;  %1666 = vperm.xlu0 %2230, %v2194_v53  }
 0x14e   :  { %v985_v48 = vmul.f32 %v3182_v39, %v976_v3  ;;  %2312 = vlog2.f32 %v987_v51  ;;  %v885_v32 = vadd.f32 %v884_v59, %v883_v58  ;;  %v2205_v59 = vld [vmem:[%s3582_s3 + $0x268] sm:$0xff] }
 0x14f   :  { %v990_v27 = vadd.f32 %v986_v47, %v957_v20 }
 0x150   :  { %v989_v29 = vadd.f32 %v985_v48, %v956_v52  ;;  %v1042_v60 = vpop.permute.xlu1 %1041  ;;  %v886_v33 = vrot.slane %v885_v32, 4  ;;  %v2201_v52 = vld [vmem:[%s3582_s3 + $0x248] sm:$0xff] }
 0x151   :  { %v1037_v39 = vpop.permute.xlu0 %1036  ;;  %2314 = vlog2.f32 %v990_v27  ;;  %1671 = vperm.xlu1 %2231, %v2195_v12   ;;  %1637 = vperm.xlu0 %2230, %v2190_v31   ;;  %v1055_v62 = vsub.f32 %v3267_v61, %v1042_v60 }
 0x152   :  { %2316 = vlog2.f32 %v989_v29  ;;  %v887_v56 = vadd.f32 %v886_v33, %v885_v32  ;;  %v1054_v1 = vsub.f32 %v3276_v0, %v1037_v39  ;;  %v2204_v29 = vld [vmem:[%s3582_s3 + $0x260] sm:$0xff] }
 0x153   :  { %v1059_v8 = vmul.f32 %v1055_v62, %v1055_v62 }
 0x154   :  { %v1052_v2 = vpop.permute.xlu1 %1051  ;;  %v888_v13 = vrot.slane %v887_v56, 2  ;;  %v1058_v9 = vmul.f32 %v1054_v1, %v1054_v1 }
 0x155   :  { %v1047_v4 = vpop.permute.xlu0 %1046  ;;  %1694 = vperm.xlu1 %2231, %v2197_v50   ;;  %1689 = vperm.xlu0 %2230, %v2196_v30   ;;  %v1057_v7 = vsub.f32 %v3285_v11, %v1052_v2  ;;  %v2214_v50 = vld [vmem:[%s3582_s3 + $0x2a8] sm:$0xff]  ;;  %v2213_v30 = vld [vmem:[%s3582_s3 + $0x2a0] sm:$0xff] }
 0x156   :  { %v889_v23 = vadd.f32 %v888_v13, %v887_v56  ;;  %v1056_v36 = vsub.f32 %v3294_v35, %v1047_v4 }
 0x157   :  { %v2311_v6 = vpop.eup %2310  ;;  %v1061_v26 = vmul.f32 %v1057_v7, %v1057_v7  ;;  %v2218_v7 = vld [vmem:[%s3582_s3 + $0x2c8] sm:$0xff] }
 0x158   :  { %v2313_v22 = vpop.eup %2312  ;;  %v994_v43 = vmul.f32 0.6931472, %v2311_v6  ;;  %v1075_v15 = vpop.permute.xlu1 %1074  ;;  %v890_v5 = vrot.slane %v889_v23, 1  ;;  %v1060_v40 = vmul.f32 %v1056_v36, %v1056_v36 }
 0x159   :  { %v992_v37 = vmul.f32 0.6931472, %v2313_v22  ;;  %v3297_v38 = vmul.f32 %v1075_v15, %v1059_v8  ;;  %v1070_v14 = vpop.permute.xlu0 %1069  ;;  %1642 = vperm.xlu1 %2231, %v2191_v28   ;;  %1580 = vperm.xlu0 %2230, %v2183_v19   ;;  %v2217_v22 = vld [vmem:[%s3582_s3 + $0x2c0] sm:$0xff] }
 0x15a   :  { %v1000_v41 = vsel %vm266_vm0, %v994_v43, 0.0  ;;  %v3300_v17 = vmul.f32 %v1070_v14, %v1058_v9  ;;  %v891_v25 = vadd.f32 %v890_v5, %v889_v23 }
 0x15b   :  { %v2315_v24 = vpop.eup %2314  ;;  %v999_v63 = vsel %vm266_vm0, %v992_v37, 0.0 }
 0x15c   :  { %v2317_v16 = vpop.eup %2316  ;;  %v1001_v46 = vadd.f32 %v1000_v41, %v999_v63  ;;  %v1085_v44 = vpop.permute.xlu1 %1084  ;;  %v998_v55 = vmul.f32 0.6931472, %v2315_v24  ;;  %v892_v10 = vadd.f32 %v891_v25, %v3309_v49  ;;  %v2206_v41 = vld [vmem:[%s3582_s3 + $0x270] sm:$0xff]  ;;  %v894_v63 = vstv %s3339_s21 }
 0x15d   :  { %v996_v51 = vmul.f32 0.6931472, %v2317_v16  ;;  %v3311_v53 = vmul.f32 %v1085_v44, %v1061_v26  ;;  %v1080_v34 = vpop.permute.xlu0 %1079  ;;  %1704 = vperm.xlu1 %2231, %v2199_v18   ;;  %1699 = vperm.xlu0 %2230, %v2198_v42   ;;  %v2202_v24 = vld [vmem:[%s3582_s3 + $0x250] sm:$0xff]  ;;  %v1014_v26 = vstv %s3341_s22 }
 0x15e   :  { %v3313_v20 = vmul.f32 %v1080_v34, %v1060_v40  ;;  %v1004_v58 = vsel %vm266_vm0, %v998_v55, 0.0  ;;  %v2209_v40 = vld [vmem:[%s3582_s3 + $0x288] sm:$0xff]  ;;  %v895_v44 = vadd.f32 %v894_v63, %v892_v10  ;;  %v2208_v34 = vld [vmem:[%s3582_s3 + $0x280] sm:$0xff] }
 0x15f   :  { %v1002_v3 = vsel %vm266_vm0, %v996_v51, 0.0 }
 0x160   :  { %v1003_v47 = vadd.f32 %v1002_v3, %v1001_v46  ;;  %v1104_v48 = vpop.permute.xlu1 %1103 }
 0x161   :  { %v1099_v12 = vpop.permute.xlu0 %1098  ;;  %1780 = vperm.xlu1 %2231, %v2201_v52   ;;  %1775 = vperm.xlu0 %2230, %v2200_v21   ;;  %v1117_v27 = vsub.f32 %v3267_v61, %v1104_v48 }
 0x162   :  { %v1005_v54 = vadd.f32 %v1004_v58, %v1003_v47  ;;  %v1116_v32 = vsub.f32 %v3276_v0, %v1099_v12  ;;  %v2219_v47 = vld [vmem:[%s3582_s3 + $0x2d0] sm:$0xff] }
 0x163   :  { %v1121_v57 = vmul.f32 %v1117_v27, %v1117_v27  ;;  %v2215_v12 = vld [vmem:[%s3582_s3 + $0x2b0] sm:$0xff] }
 0x164   :  { %v1006_v31 = vrot.slane %v1005_v54, 4  ;;  %v1114_v60 = vpop.permute.xlu1 %1113  ;;  %v1120_v1 = vmul.f32 %v1116_v32, %v1116_v32 }
 0x165   :  { %v1109_v39 = vpop.permute.xlu0 %1108  ;;  %1809 = vperm.xlu1 %2231, %v2205_v59   ;;  %1804 = vperm.xlu0 %2230, %v2204_v29   ;;  %v1119_v62 = vsub.f32 %v3285_v11, %v1114_v60 }
 0x166   :  { %v1007_v33 = vadd.f32 %v1006_v31, %v1005_v54  ;;  %v1118_v2 = vsub.f32 %v3294_v35, %v1109_v39 }
 0x167   :  { %v1123_v19 = vmul.f32 %v1119_v62, %v1119_v62  ;;  %v2221_v62 = vld [vmem:[%s3582_s3 + $0x2e0] sm:$0xff] }
 0x168   :  { %v1008_v56 = vrot.slane %v1007_v33, 2  ;;  %v1137_v4 = vpop.permute.xlu1 %1136  ;;  %v1122_v43 = vmul.f32 %v1118_v2, %v1118_v2 }
 0x169   :  { %v3344_v13 = vmul.f32 %v1137_v4, %v1121_v57  ;;  %v1132_v28 = vpop.permute.xlu0 %1131  ;;  %1900 = vperm.xlu1 %2231, %v2214_v50   ;;  %1895 = vperm.xlu0 %2230, %v2213_v30  }
 0x16a   :  { %v1009_v6 = vadd.f32 %v1008_v56, %v1007_v33  ;;  %v3346_v8 = vmul.f32 %v1132_v28, %v1120_v1  ;;  %v2222_v33 = vld [vmem:[%s3582_s3 + $0x2e8] sm:$0xff] }
 0x16b   :  { %v1216_v45 = vmax.f32 %v3297_v38, %v3344_v13 }
 0x16c   :  { %v1010_v23 = vrot.slane %v1009_v6, 1  ;;  %v1215_v9 = vmax.f32 %v3300_v17, %v3346_v8  ;;  %v1147_v36 = vpop.permute.xlu1 %1146 }
 0x16d   :  { %v3358_v15 = vmul.f32 %v1147_v36, %v1123_v19  ;;  %v1142_v37 = vpop.permute.xlu0 %1141  ;;  %1929 = vperm.xlu1 %2231, %v2218_v7   ;;  %1924 = vperm.xlu0 %2230, %v2217_v22   ;;  %v2203_v36 = vld [vmem:[%s3582_s3 + $0x258] sm:$0xff] }
 0x16e   :  { %v1011_v14 = vadd.f32 %v1010_v23, %v1009_v6  ;;  %v3360_v5 = vmul.f32 %v1142_v37, %v1122_v43  ;;  %v2207_v43 = vld [vmem:[%s3582_s3 + $0x278] sm:$0xff] }
 0x16f   :  { %v1218_v18 = vmax.f32 %v3311_v53, %v3358_v15 }
 0x170   :  { %v1217_v42 = vmax.f32 %v3313_v20, %v3360_v5  ;;  %v1166_v16 = vpop.permute.xlu1 %1165  ;;  %v1012_v25 = vadd.f32 %v1011_v14, %v3309_v49 }
 0x171   :  { %v1161_v46 = vpop.permute.xlu0 %1160  ;;  %1814 = vperm.xlu1 %2231, %v2206_v41   ;;  %1785 = vperm.xlu0 %2230, %v2202_v24   ;;  %v1179_v51 = vsub.f32 %v3267_v61, %v1166_v16 }
 0x172   :  { %v1015_v55 = vadd.f32 %v1014_v26, %v1012_v25  ;;  %v1178_v52 = vsub.f32 %v3276_v0, %v1161_v46  ;;  %v2216_v26 = vld [vmem:[%s3582_s3 + $0x2b8] sm:$0xff]  ;;  %v2210_v46 = vld [vmem:[%s3582_s3 + $0x290] sm:$0xff] }
 0x173   :  { %v1183_v58 = vmul.f32 %v1179_v51, %v1179_v51 }
 0x174   :  { %v1176_v3 = vpop.permute.xlu1 %1175  ;;  %v3383_v21 = vmax.f32 %v895_v44, %v1015_v55  ;;  %v1182_v54 = vmul.f32 %v1178_v52, %v1178_v52 }
 0x175   :  { %v1171_v49 = vpop.permute.xlu0 %1170  ;;  %1842 = vperm.xlu1 %2231, %v2209_v40   ;;  %1837 = vperm.xlu0 %2230, %v2208_v34   ;;  %v1181_v59 = vsub.f32 %v3285_v11, %v1176_v3 }
 0x176   :  { %v1017_v10 = vsub.f32 %v895_v44, %v3383_v21  ;;  %v1020_v48 = vsub.f32 %v1015_v55, %v3383_v21  ;;  %v1180_v50 = vsub.f32 %v3294_v35, %v1171_v49 }
 0x177   :  { %v1185_v30 = vmul.f32 %v1181_v59, %v1181_v59 }
 0x178   :  { %v1199_v27 = vpop.permute.xlu1 %1198  ;;  %v1018_v29 = vmul.f32 1.442695, %v1017_v10  ;;  %v1021_v31 = vmul.f32 1.442695, %v1020_v48 }
 0x179   :  { %v1212_v32 = vmul.f32 %v1199_v27, %v1183_v58  ;;  %v1194_v60 = vpop.permute.xlu0 %1193  ;;  %1934 = vperm.xlu1 %2231, %v2219_v47   ;;  %1905 = vperm.xlu0 %2230, %v2215_v12  }
 0x17a   :  { %v1211_v39 = vmul.f32 %v1194_v60, %v1182_v54  ;;  %2318 = vpow2.f32 %v1018_v29 }
 0x17b   :  { %v1220_v57 = vmax.f32 %v1216_v45, %v1212_v32  ;;  %2320 = vpow2.f32 %v1021_v31 }
 0x17c   :  { %v1219_v56 = vmax.f32 %v1215_v9, %v1211_v39  ;;  %v1209_v1 = vpop.permute.xlu1 %1208 }
 0x17d   :  { %v1224_v2 = vsub.f32 %v3297_v38, %v1220_v57  ;;  %v1236_v4 = vsub.f32 %v3344_v13, %v1220_v57  ;;  %v1248_v28 = vsub.f32 %v1212_v32, %v1220_v57  ;;  %v1260_v6 = vsel %vm266_vm0, %v1220_v57, 0.0  ;;  %v1204_v7 = vpop.permute.xlu0 %1203  ;;  %1962 = vperm.xlu1 %2231, %v2222_v33   ;;  %1957 = vperm.xlu0 %2230, %v2221_v62  }
 0x17e   :  { %v1223_v19 = vsub.f32 %v3300_v17, %v1219_v56  ;;  %v1235_v45 = vsub.f32 %v3346_v8, %v1219_v56  ;;  %v1247_v22 = vsub.f32 %v1211_v39, %v1219_v56  ;;  %v1259_v23 = vsel %vm266_vm0, %v1219_v56, 0.0  ;;  %v2224_v39 = vld [vmem:[%s3582_s3 + $0x2f8] sm:$0xff] }
 0x17f   :  { %v1184_v38 = vmul.f32 %v1180_v50, %v1180_v50  ;;  %v1253_v9 = vmul.f32 1.442695, %v1248_v28  ;;  %v1261_v13 = vadd.f32 %v1260_v6, %v1259_v23  ;;  %v1214_v14 = vmul.f32 %v1209_v1, %v1185_v30  ;;  %v2211_v50 = vld [vmem:[%s3582_s3 + $0x298] sm:$0xff] }
 0x180   :  { %v1251_v37 = vmul.f32 1.442695, %v1247_v22  ;;  %v3413_v17 = vpop.permute.xlu1 %1284  ;;  %v1229_v24 = vmul.f32 1.442695, %v1224_v2  ;;  %v1227_v16 = vmul.f32 1.442695, %v1223_v19 }
 0x181   :  { %v1213_v8 = vmul.f32 %v1204_v7, %v1184_v38  ;;  %v3415_v41 = vpop.permute.xlu0 %1279  ;;  %1819 = vperm.xlu1 %2231, %v2207_v43   ;;  %v1222_v63 = vmax.f32 %v1218_v18, %v1214_v14  ;;  %1790 = vperm.xlu0 %2230, %v2203_v36   ;;  %2322 = vpow2.f32 %v1253_v9  ;;  %v1241_v54 = vmul.f32 1.442695, %v1236_v4 }
 0x182   :  { %2324 = vpow2.f32 %v1251_v37  ;;  %v1239_v31 = vmul.f32 1.442695, %v1235_v45 }
 0x183   :  { %v1221_v25 = vmax.f32 %v1217_v42, %v1213_v8  ;;  %v1226_v44 = vsub.f32 %v3311_v53, %v1222_v63  ;;  %v1238_v18 = vsub.f32 %v3358_v15, %v1222_v63  ;;  %v1250_v55 = vsub.f32 %v1214_v14, %v1222_v63  ;;  %v2223_v53 = vld [vmem:[%s3582_s3 + $0x2f0] sm:$0xff] }
 0x184   :  { %v2319_v40 = vpop.eup %2318  ;;  %v1295_v51 = vpop.permute.xlu1 %1294  ;;  %2326 = vpow2.f32 %v1229_v24  ;;  %v1264_v15 = vsel %vm266_vm0, %v1222_v63, 0.0 }
 0x185   :  { %v2321_v34 = vpop.eup %2320  ;;  %v1225_v52 = vsub.f32 %v3313_v20, %v1221_v25  ;;  %v1237_v3 = vsub.f32 %v3360_v5, %v1221_v25  ;;  %v1249_v49 = vsub.f32 %v1213_v8, %v1221_v25  ;;  %v1262_v42 = vsel %vm266_vm0, %v1221_v25, 0.0  ;;  %v1290_v47 = vpop.permute.xlu0 %1289  ;;  %1910 = vperm.xlu1 %2231, %v2216_v26   ;;  %1847 = vperm.xlu0 %2230, %v2210_v46   ;;  %v2220_v5 = vld [vmem:[%s3582_s3 + $0x2d8] sm:$0xff]  ;;  %s2161_s3 = sld [smem:[#allocation2 + $0x100]] }
 0x186   :  { %v1233_v10 = vmul.f32 1.442695, %v1226_v44  ;;  %v1257_v48 = vmul.f32 1.442695, %v1250_v55  ;;  %v1263_v58 = vadd.f32 %v1262_v42, %v1261_v13  ;;  %2328 = vpow2.f32 %v1227_v16 }
 0x187   :  { %v1231_v12 = vmul.f32 1.442695, %v1225_v52  ;;  %v1255_v20 = vmul.f32 1.442695, %v1249_v49  ;;  %v1023_v29 = vadd.f32 %v2321_v34, %v2319_v40  ;;  %v1245_v60 = vmul.f32 1.442695, %v1238_v18 }
 0x188   :  { %2330 = vpow2.f32 %v1257_v48  ;;  %v3441_v59 = vadd.f32 %v1264_v15, %v1263_v58  ;;  %v1314_v27 = vpop.permute.xlu1 %1313  ;;  %v1243_v33 = vmul.f32 1.442695, %v1237_v3 }
 0x189   :  { %2332 = vpow2.f32 %v1255_v20  ;;  %v1309_v32 = vpop.permute.xlu0 %1308  ;;  %1967 = vperm.xlu1 %2231, %v2223_v53   ;;  %1939 = vperm.xlu0 %2230, %v2220_v5  }
 0x18a   :  { %2334 = vpow2.f32 %v1233_v10 }
 0x18b   :  { %2336 = vpow2.f32 %v1231_v12  ;;  %v3449_v62 = vpop.eup %2322 }
 0x18c   :  { %2338 = vpow2.f32 %v1241_v54  ;;  %v1324_v57 = vpop.permute.xlu1 %1323  ;;  %v3451_v56 = vpop.eup %2324 }
 0x18d   :  { %2340 = vpow2.f32 %v1239_v31  ;;  %v1319_v30 = vpop.permute.xlu0 %1318  ;;  %1972 = vperm.xlu1 %2231, %v2224_v39   ;;  %1852 = vperm.xlu0 %2230, %v2211_v50  }
 0x18e   :  { %2342 = vpow2.f32 %v1245_v60  ;;  %v2327_v1 = vpop.eup %2326 }
 0x18f   :  { %2344 = vpow2.f32 %v1243_v33  ;;  %v1298_v23 = vmul.f32 %v2327_v1, %v3413_v17 }
 0x190   :  { %v1347_v2 = vpop.permute.xlu1 %1346  ;;  %2346 = vlog2.f32 %v1023_v29  ;;  %v2329_v4 = vpop.eup %2328 }
 0x191   :  { %v1342_v28 = vpop.permute.xlu0 %1341  ;;  %v1297_v9 = vmul.f32 %v2329_v4, %v3415_v41  ;;  %v1360_v14 = vmul.f32 %v3449_v62, %v1347_v2 }
 0x192   :  { %v3453_v6 = vpop.eup %2330  ;;  %v1359_v26 = vmul.f32 %v3451_v56, %v1342_v28 }
 0x193   :  { %v3455_v7 = vpop.eup %2332 }
 0x194   :  { %v2335_v19 = vpop.eup %2334  ;;  %v1357_v45 = vpop.permute.xlu1 %1356 }
 0x195   :  { %v2337_v22 = vpop.eup %2336  ;;  %v1352_v43 = vpop.permute.xlu0 %1351  ;;  %v1300_v36 = vmul.f32 %v2335_v19, %v1295_v51  ;;  %v1362_v17 = vmul.f32 %v3453_v6, %v1357_v45  ;;  %v1266_v45 = vrot.slane %v3441_v59, 4 }
 0x196   :  { %v2339_v38 = vpop.eup %2338  ;;  %v1299_v24 = vmul.f32 %v2337_v22, %v1290_v47  ;;  %v1361_v51 = vmul.f32 %v3455_v7, %v1352_v43 }
 0x197   :  { %v2341_v13 = vpop.eup %2340  ;;  %v1327_v37 = vmul.f32 %v2339_v38, %v1314_v27 }
 0x198   :  { %v2343_v8 = vpop.eup %2342  ;;  %v1326_v63 = vmul.f32 %v2341_v13, %v1309_v32  ;;  %v1405_v16 = vpop.permute.xlu1 %1404 }
 0x199   :  { %v2345_v25 = vpop.eup %2344  ;;  %v1331_v46 = vadd.f32 %v1327_v37, %v1298_v23  ;;  %v1329_v40 = vmul.f32 %v2343_v8, %v1324_v57  ;;  %v1400_v44 = vpop.permute.xlu0 %1399  ;;  %v1418_v20 = vmul.f32 %v2327_v1, %v1405_v16 }
 0x19a   :  { %v2347_v18 = vpop.eup %2346  ;;  %v1330_v55 = vadd.f32 %v1326_v63, %v1297_v9  ;;  %v1328_v41 = vmul.f32 %v2345_v25, %v1319_v30  ;;  %v1417_v27 = vmul.f32 %v2329_v4, %v1400_v44  ;;  %v1267_v63 = vadd.f32 %v1266_v45, %v3441_v59 }
 0x19b   :  { %v1333_v34 = vadd.f32 %v1329_v40, %v1300_v36  ;;  %v1364_v52 = vadd.f32 %v1360_v14, %v1331_v46  ;;  %v1025_v3 = vmul.f32 0.6931472, %v2347_v18 }
 0x19c   :  { %v1332_v49 = vadd.f32 %v1328_v41, %v1299_v24  ;;  %v1363_v42 = vadd.f32 %v1359_v26, %v1330_v55  ;;  %v1415_v47 = vpop.permute.xlu1 %1414  ;;  %v1268_v55 = vrot.slane %v1267_v63, 2 }
 0x19d   :  { %2348 = vlog2.f32 %v1364_v52  ;;  %v1366_v10 = vadd.f32 %v1362_v17, %v1333_v34  ;;  %v1410_v48 = vpop.permute.xlu0 %1409  ;;  %v1026_v58 = vadd.f32 %v1025_v3, %v3383_v21  ;;  %v1420_v39 = vmul.f32 %v2335_v19, %v1415_v47 }
 0x19e   :  { %2350 = vlog2.f32 %v1363_v42  ;;  %v1365_v53 = vadd.f32 %v1361_v51, %v1332_v49  ;;  %v1419_v21 = vmul.f32 %v2337_v22, %v1410_v48  ;;  %v1269_v3 = vadd.f32 %v1268_v55, %v1267_v63 }
 0x19f   :  { %2352 = vlog2.f32 %v1366_v10  ;;  %v2124_v15 = vadd.f32 -29.406033, %v1026_v58 }
 0x1a0   :  { %2354 = vlog2.f32 %v1365_v53  ;;  %v1434_v12 = vpop.permute.xlu1 %1433  ;;  %v1270_v48 = vrot.slane %v1269_v3, 1 }
 0x1a1   :  { %v1447_v5 = vmul.f32 %v2339_v38, %v1434_v12  ;;  %v1429_v54 = vpop.permute.xlu0 %1428  ;;  %1028 = vst.msk [vmem:[#allocation5 + $0x1] sm:$0x1] %vm531_vm1, %v2124_v15 }
 0x1a2   :  { %v1446_v29 = vmul.f32 %v2341_v13, %v1429_v54 }
 0x1a3   :  { %v1451_v31 = vadd.f32 %v1447_v5, %v1418_v20 }
 0x1a4   :  { %v1450_v32 = vadd.f32 %v1446_v29, %v1417_v27  ;;  %v1444_v60 = vpop.permute.xlu1 %1443 }
 0x1a5   :  { %v1449_v33 = vmul.f32 %v2343_v8, %v1444_v60  ;;  %v1439_v50 = vpop.permute.xlu0 %1438 }
 0x1a6   :  { %v1448_v57 = vmul.f32 %v2345_v25, %v1439_v50 }
 0x1a7   :  { %v2349_v30 = vpop.eup %2348  ;;  %v1453_v2 = vadd.f32 %v1449_v33, %v1420_v39  ;;  %v1271_v33 = vadd.f32 %v1270_v48, %v1269_v3 }
 0x1a8   :  { %v2351_v28 = vpop.eup %2350  ;;  %v1370_v1 = vmul.f32 0.6931472, %v2349_v30  ;;  %v1452_v23 = vadd.f32 %v1448_v57, %v1419_v21  ;;  %v1467_v43 = vpop.permute.xlu1 %1466 }
 0x1a9   :  { %v2353_v38 = vpop.eup %2352  ;;  %v1368_v9 = vmul.f32 0.6931472, %v2351_v28  ;;  %v1480_v4 = vmul.f32 %v3449_v62, %v1467_v43  ;;  %v1462_v13 = vpop.permute.xlu0 %1461 }
 0x1aa   :  { %v2355_v36 = vpop.eup %2354  ;;  %v1376_v19 = vsel %vm266_vm0, %v1370_v1, 0.0  ;;  %v1479_v37 = vmul.f32 %v3451_v56, %v1462_v13  ;;  %v1374_v14 = vmul.f32 0.6931472, %v2353_v38 }
 0x1ab   :  { %v1375_v22 = vsel %vm266_vm0, %v1368_v9, 0.0  ;;  %v1372_v8 = vmul.f32 0.6931472, %v2355_v36  ;;  %v1484_v24 = vadd.f32 %v1480_v4, %v1451_v31 }
 0x1ac   :  { %v1377_v26 = vadd.f32 %v1376_v19, %v1375_v22  ;;  %v1483_v16 = vadd.f32 %v1479_v37, %v1450_v32  ;;  %v1477_v25 = vpop.permute.xlu1 %1476  ;;  %v1380_v44 = vsel %vm266_vm0, %v1374_v14, 0.0 }
 0x1ad   :  { %v1378_v46 = vsel %vm266_vm0, %v1372_v8, 0.0  ;;  %2356 = vlog2.f32 %v1484_v24  ;;  %v1482_v62 = vmul.f32 %v3453_v6, %v1477_v25  ;;  %v1472_v40 = vpop.permute.xlu0 %1471 }
 0x1ae   :  { %v1379_v17 = vadd.f32 %v1378_v46, %v1377_v26  ;;  %2358 = vlog2.f32 %v1483_v16  ;;  %v1481_v56 = vmul.f32 %v3455_v7, %v1472_v40  ;;  %v1390_v26 = vstv %s2161_s3 }
 0x1af   :  { %v1486_v18 = vadd.f32 %v1482_v62, %v1453_v2  ;;  %v1510_v16 = vstv %s2174_s29 }
 0x1b0   :  { %v1381_v41 = vadd.f32 %v1380_v44, %v1379_v17  ;;  %v1485_v51 = vadd.f32 %v1481_v56, %v1452_v23  ;;  %v1538_v59 = vpop.permute.xlu1 %1537 }
 0x1b1   :  { %2360 = vlog2.f32 %v1486_v18  ;;  %v3475_v34 = vpop.permute.xlu0 %1532  ;;  %v1551_v55 = vsub.f32 %v3267_v61, %v1538_v59 }
 0x1b2   :  { %v1382_v52 = vrot.slane %v1381_v41, 4  ;;  %2362 = vlog2.f32 %v1485_v51 }
 0x1b3   :  { %v1555_v48 = vmul.f32 %v1551_v55, %v1551_v55 }
 0x1b4   :  { %v1383_v49 = vadd.f32 %v1382_v52, %v1381_v41  ;;  %v3477_v6 = vpop.permute.xlu1 %1547 }
 0x1b5   :  { %v3479_v42 = vpop.permute.xlu0 %1542 }
 0x1b6   :  { %v1384_v47 = vrot.slane %v1383_v49, 2 }
 0x1b7   :  { %v2357_v7 = vpop.eup %2356 }
 0x1b8   :  { %v2359_v10 = vpop.eup %2358  ;;  %v1385_v58 = vadd.f32 %v1384_v47, %v1383_v49  ;;  %v1490_v53 = vmul.f32 0.6931472, %v2357_v7  ;;  %v1571_v15 = vpop.permute.xlu1 %1570  ;;  %v1550_v7 = vsub.f32 %v3276_v0, %v3475_v34  ;;  %v1552_v34 = vsub.f32 %v3294_v35, %v3479_v42 }
 0x1b9   :  { %v1488_v12 = vmul.f32 0.6931472, %v2359_v10  ;;  %v3481_v20 = vpop.permute.xlu0 %1565 }
 0x1ba   :  { %v1386_v5 = vrot.slane %v1385_v58, 1  ;;  %v1496_v54 = vsel %vm266_vm0, %v1490_v53, 0.0 }
 0x1bb   :  { %v2361_v27 = vpop.eup %2360  ;;  %v1495_v29 = vsel %vm266_vm0, %v1488_v12, 0.0 }
 0x1bc   :  { %v2363_v31 = vpop.eup %2362  ;;  %v1387_v32 = vadd.f32 %v1386_v5, %v1385_v58  ;;  %v1497_v60 = vadd.f32 %v1496_v54, %v1495_v29  ;;  %v1600_v39 = vpop.permute.xlu1 %1599  ;;  %v1494_v50 = vmul.f32 0.6931472, %v2361_v27  ;;  %v1584_v5 = vmul.f32 %v1571_v15, %v1555_v48 }
 0x1bd   :  { %v1492_v21 = vmul.f32 0.6931472, %v2363_v31  ;;  %v1595_v57 = vpop.permute.xlu0 %1594  ;;  %v1613_v56 = vsub.f32 %v3267_v61, %v1600_v39  ;;  %v1554_v31 = vmul.f32 %v1550_v7, %v1550_v7 }
 0x1be   :  { %v1388_v30 = vadd.f32 %v1387_v32, %v1271_v33  ;;  %v1500_v1 = vsel %vm266_vm0, %v1494_v50, 0.0  ;;  %v1612_v47 = vsub.f32 %v3276_v0, %v1595_v57 }
 0x1bf   :  { %v1498_v2 = vsel %vm266_vm0, %v1492_v21, 0.0  ;;  %v1617_v49 = vmul.f32 %v1613_v56, %v1613_v56 }
 0x1c0   :  { %v1499_v28 = vadd.f32 %v1498_v2, %v1497_v60  ;;  %v1657_v45 = vpop.permute.xlu1 %1656  ;;  %v1391_v40 = vadd.f32 %v1390_v26, %v1388_v30 }
 0x1c1   :  { %v1605_v23 = vpop.permute.xlu0 %1604  ;;  %v1674_v58 = vsub.f32 %v3276_v0, %v1657_v45  ;;  %v1583_v0 = vmul.f32 %v3481_v20, %v1554_v31  ;;  %v1556_v45 = vmul.f32 %v1552_v34, %v1552_v34 }
 0x1c2   :  { %v1501_v43 = vadd.f32 %v1500_v1, %v1499_v28  ;;  %v1614_v27 = vsub.f32 %v3294_v35, %v1605_v23 }
 0x1c3   :  { %v1678_v32 = vmul.f32 %v1674_v58, %v1674_v58 }
 0x1c4   :  { %v1502_v38 = vrot.slane %v1501_v43, 4  ;;  %v3487_v9 = vpop.permute.xlu1 %1609  ;;  %v1618_v57 = vmul.f32 %v1614_v27, %v1614_v27 }
 0x1c5   :  { %v1662_v4 = vpop.permute.xlu0 %1661 }
 0x1c6   :  { %v1503_v13 = vadd.f32 %v1502_v38, %v1501_v43  ;;  %v1675_v41 = vsub.f32 %v3267_v61, %v1662_v4  ;;  %v1616_v61 = vmul.f32 %v1612_v47, %v1612_v47 }
 0x1c8   :  { %v1504_v36 = vrot.slane %v1503_v13, 2  ;;  %v1633_v19 = vpop.permute.xlu1 %1632  ;;  %v1679_v53 = vmul.f32 %v1675_v41, %v1675_v41 }
 0x1c9   :  { %v1628_v37 = vpop.permute.xlu0 %1627  ;;  %v1646_v12 = vmul.f32 %v1633_v19, %v1617_v49 }
 0x1ca   :  { %v1505_v22 = vadd.f32 %v1504_v36, %v1503_v13  ;;  %v1645_v39 = vmul.f32 %v1628_v37, %v1616_v61  ;;  %v1553_v13 = vsub.f32 %v3285_v11, %v3477_v6  ;;  %v1615_v36 = vsub.f32 %v3285_v11, %v3487_v9 }
 0x1cb   :  { %v1712_v60 = vmax.f32 %v1584_v5, %v1646_v12 }
 0x1cc   :  { %v1506_v14 = vrot.slane %v1505_v22, 1  ;;  %v1576_v8 = vpop.permute.xlu1 %1575  ;;  %v1711_v2 = vmax.f32 %v1583_v0, %v1645_v39  ;;  %v1619_v9 = vmul.f32 %v1615_v36, %v1615_v36 }
 0x1cd   :  { %v1667_v24 = vpop.permute.xlu0 %1666  ;;  %v1585_v42 = vmul.f32 %v1576_v8, %v1556_v45 }
 0x1ce   :  { %v1507_v63 = vadd.f32 %v1506_v14, %v1505_v22  ;;  %v1676_v50 = vsub.f32 %v3294_v35, %v1667_v24 }
 0x1d0   :  { %v1672_v25 = vpop.permute.xlu1 %1671  ;;  %v1508_v46 = vadd.f32 %v1507_v63, %v1271_v33  ;;  %v1680_v1 = vmul.f32 %v1676_v50, %v1676_v50 }
 0x1d1   :  { %v1638_v62 = vpop.permute.xlu0 %1637  ;;  %v1677_v22 = vsub.f32 %v3285_v11, %v1672_v25 }
 0x1d2   :  { %v1511_v17 = vadd.f32 %v1510_v16, %v1508_v46  ;;  %v1647_v23 = vmul.f32 %v1638_v62, %v1618_v57  ;;  %v1557_v62 = vmul.f32 %v1553_v13, %v1553_v13 }
 0x1d3   :  { %v1681_v56 = vmul.f32 %v1677_v22, %v1677_v22 }
 0x1d4   :  { %v1695_v44 = vpop.permute.xlu1 %1694  ;;  %v3490_v18 = vmax.f32 %v1391_v40, %v1511_v17  ;;  %v1713_v19 = vmax.f32 %v1585_v42, %v1647_v23 }
 0x1d5   :  { %v1690_v51 = vpop.permute.xlu0 %1689  ;;  %v1708_v54 = vmul.f32 %v1695_v44, %v1679_v53 }
 0x1d6   :  { %v1513_v52 = vsub.f32 %v1391_v40, %v3490_v18  ;;  %v1516_v3 = vsub.f32 %v1511_v17, %v3490_v18  ;;  %v1707_v15 = vmul.f32 %v1690_v51, %v1678_v32 }
 0x1d7   :  { %v3505_v21 = vmax.f32 %v1712_v60, %v1708_v54 }
 0x1d8   :  { %v1643_v10 = vpop.permute.xlu1 %1642  ;;  %v3512_v38 = vmax.f32 %v1711_v2, %v1707_v15  ;;  %v1514_v26 = vmul.f32 1.442695, %v1513_v52  ;;  %v1517_v6 = vmul.f32 1.442695, %v1516_v3 }
 0x1d9   :  { %v1581_v59 = vpop.permute.xlu0 %1580  ;;  %v1720_v43 = vsub.f32 %v1584_v5, %v3505_v21  ;;  %v1732_v37 = vsub.f32 %v1646_v12, %v3505_v21  ;;  %v1744_v17 = vsub.f32 %v1708_v54, %v3505_v21  ;;  %v1648_v44 = vmul.f32 %v1643_v10, %v1619_v9 }
 0x1da   :  { %v1719_v24 = vsub.f32 %v1583_v0, %v3512_v38  ;;  %v1731_v16 = vsub.f32 %v1645_v39, %v3512_v38  ;;  %v1743_v25 = vsub.f32 %v1707_v15, %v3512_v38  ;;  %v1586_v55 = vmul.f32 %v1581_v59, %v1557_v62 }
 0x1db   :  { %v1725_v14 = vmul.f32 1.442695, %v1720_v43  ;;  %v1737_v40 = vmul.f32 1.442695, %v1732_v37  ;;  %v1749_v47 = vmul.f32 1.442695, %v1744_v17 }
 0x1dc   :  { %v1705_v29 = vpop.permute.xlu1 %1704  ;;  %v1723_v11 = vmul.f32 1.442695, %v1719_v24  ;;  %v1735_v52 = vmul.f32 1.442695, %v1731_v16  ;;  %v1747_v48 = vmul.f32 1.442695, %v1743_v25  ;;  %v1714_v58 = vmax.f32 %v1586_v55, %v1648_v44 }
 0x1dd   :  { %v1700_v33 = vpop.permute.xlu0 %1699  ;;  %2364 = vpow2.f32 %v1725_v14  ;;  %v1710_v7 = vmul.f32 %v1705_v29, %v1681_v56 }
 0x1de   :  { %v1709_v35 = vmul.f32 %v1700_v33, %v1680_v1  ;;  %2366 = vpow2.f32 %v1514_v26 }
 0x1df   :  { %2368 = vpow2.f32 %v1517_v6  ;;  %v3536_v59 = vmax.f32 %v1714_v58, %v1710_v7 }
 0x1e0   :  { %v3507_v30 = vpop.permute.xlu1 %1780  ;;  %v3525_v8 = vmax.f32 %v1713_v19, %v1709_v35  ;;  %2370 = vpow2.f32 %v1737_v40 }
 0x1e1   :  { %v3509_v28 = vpop.permute.xlu0 %1775  ;;  %2372 = vpow2.f32 %v1723_v11  ;;  %v1734_v32 = vsub.f32 %v1648_v44, %v3536_v59  ;;  %v1722_v33 = vsub.f32 %v1586_v55, %v3536_v59  ;;  %v1746_v15 = vsub.f32 %v1710_v7, %v3536_v59 }
 0x1e2   :  { %v1733_v41 = vsub.f32 %v1647_v23, %v3525_v8  ;;  %v1721_v49 = vsub.f32 %v1585_v42, %v3525_v8  ;;  %2374 = vpow2.f32 %v1735_v52  ;;  %v1745_v61 = vsub.f32 %v1709_v35, %v3525_v8 }
 0x1e3   :  { %2376 = vpow2.f32 %v1749_v47  ;;  %v1741_v45 = vmul.f32 1.442695, %v1734_v32  ;;  %v1729_v23 = vmul.f32 1.442695, %v1722_v33  ;;  %v1753_v37 = vmul.f32 1.442695, %v1746_v15 }
 0x1e4   :  { %v3514_v4 = vpop.permute.xlu1 %1809  ;;  %v1739_v53 = vmul.f32 1.442695, %v1733_v41  ;;  %v1727_v5 = vmul.f32 1.442695, %v1721_v49  ;;  %2378 = vpow2.f32 %v1747_v48  ;;  %v1751_v60 = vmul.f32 1.442695, %v1745_v61 }
 0x1e5   :  { %v3516_v20 = vpop.permute.xlu0 %1804  ;;  %v1755_v32 = vsel %vm266_vm0, %v3512_v38, 0.0 }
 0x1e6   :  { %2380 = vpow2.f32 %v1739_v53 }
 0x1e7   :  { %v2365_v27 = vpop.eup %2364  ;;  %2382 = vpow2.f32 %v1727_v5 }
 0x1e8   :  { %v3527_v63 = vpop.permute.xlu1 %1900  ;;  %v2367_v31 = vpop.eup %2366  ;;  %2384 = vpow2.f32 %v1751_v60  ;;  %v1794_v43 = vmul.f32 %v2365_v27, %v3507_v30 }
 0x1e9   :  { %v3530_v46 = vpop.permute.xlu0 %1895  ;;  %v2369_v39 = vpop.eup %2368  ;;  %v1914_v22 = vmul.f32 %v2365_v27, %v3527_v63 }
 0x1ea   :  { %v2371_v34 = vpop.eup %2370  ;;  %v1519_v0 = vadd.f32 %v2369_v39, %v2367_v31 }
 0x1eb   :  { %v2373_v2 = vpop.eup %2372  ;;  %v1823_v42 = vmul.f32 %v2371_v34, %v3514_v4 }
 0x1ec   :  { %v1930_v51 = vpop.permute.xlu1 %1929  ;;  %v2375_v1 = vpop.eup %2374  ;;  %2386 = vlog2.f32 %v1519_v0  ;;  %v1793_v6 = vmul.f32 %v2373_v2, %v3509_v28  ;;  %v1913_v40 = vmul.f32 %v2373_v2, %v3530_v46 }
 0x1ed   :  { %v1925_v3 = vpop.permute.xlu0 %1924  ;;  %v2377_v35 = vpop.eup %2376  ;;  %v1943_v13 = vmul.f32 %v2371_v34, %v1930_v51  ;;  %v1822_v62 = vmul.f32 %v2375_v1, %v3516_v20  ;;  %2388 = vpow2.f32 %v1741_v45  ;;  %v1827_v4 = vadd.f32 %v1823_v42, %v1794_v43 }
 0x1ee   :  { %v2379_v19 = vpop.eup %2378  ;;  %v1942_v14 = vmul.f32 %v2375_v1, %v1925_v3  ;;  %2390 = vpow2.f32 %v1729_v23  ;;  %v1758_v45 = vsel %vm266_vm0, %v3525_v8, 0.0  ;;  %v1760_v8 = vsel %vm266_vm0, %v3536_v59, 0.0 }
 0x1ef   :  { %v1947_v56 = vadd.f32 %v1943_v13, %v1914_v22  ;;  %2392 = vpow2.f32 %v1753_v37  ;;  %v1826_v41 = vadd.f32 %v1822_v62, %v1793_v6 }
 0x1f0   :  { %v1815_v12 = vpop.permute.xlu1 %1814  ;;  %v2381_v16 = vpop.eup %2380  ;;  %v1946_v63 = vadd.f32 %v1942_v14, %v1913_v40 }
 0x1f1   :  { %v1786_v10 = vpop.permute.xlu0 %1785  ;;  %v2383_v30 = vpop.eup %2382  ;;  %v1824_v51 = vmul.f32 %v2381_v16, %v1815_v12  ;;  %v1756_v12 = vsel %vm266_vm0, %v3505_v21, 0.0 }
 0x1f2   :  { %v1795_v28 = vmul.f32 %v2383_v30, %v1786_v10  ;;  %v2385_v49 = vpop.eup %2384 }
 0x1f4   :  { %v1843_v54 = vpop.permute.xlu1 %1842  ;;  %v1828_v53 = vadd.f32 %v1824_v51, %v1795_v28 }
 0x1f5   :  { %v1838_v29 = vpop.permute.xlu0 %1837  ;;  %v1856_v24 = vmul.f32 %v2377_v35, %v1843_v54 }
 0x1f6   :  { %v1855_v11 = vmul.f32 %v2379_v19, %v1838_v29  ;;  %v2387_v7 = vpop.eup %2386 }
 0x1f7   :  { %v1860_v44 = vadd.f32 %v1856_v24, %v1827_v4  ;;  %v1521_v61 = vmul.f32 0.6931472, %v2387_v7  ;;  %v2389_v54 = vpop.eup %2388 }
 0x1f8   :  { %v1935_v50 = vpop.permute.xlu1 %1934  ;;  %v1859_v3 = vadd.f32 %v1855_v11, %v1826_v41  ;;  %v2391_v31 = vpop.eup %2390 }
 0x1f9   :  { %v1906_v57 = vpop.permute.xlu0 %1905  ;;  %2394 = vlog2.f32 %v1860_v44  ;;  %v1944_v46 = vmul.f32 %v2381_v16, %v1935_v50  ;;  %v1522_v29 = vadd.f32 %v1521_v61, %v3490_v18  ;;  %v1757_v18 = vadd.f32 %v1756_v12, %v1755_v32 }
 0x1fa   :  { %v1915_v48 = vmul.f32 %v2383_v30, %v1906_v57  ;;  %v2393_v57 = vpop.eup %2392 }
 0x1fb   :  { %v2175_v15 = vadd.f32 -29.406033, %v1522_v29 }
 0x1fc   :  { %v1963_v36 = vpop.permute.xlu1 %1962  ;;  %v1948_v60 = vadd.f32 %v1944_v46, %v1915_v48 }
 0x1fd   :  { %v1958_v26 = vpop.permute.xlu0 %1957  ;;  %v1976_v9 = vmul.f32 %v2377_v35, %v1963_v36  ;;  %1524 = vst.msk [vmem:[#allocation5 + $0x2] sm:$0x1] %vm531_vm1, %v2175_v15  ;;  %v1759_v36 = vadd.f32 %v1758_v45, %v1757_v18 }
 0x1fe   :  { %v1975_v17 = vmul.f32 %v2379_v19, %v1958_v26 }
 0x1ff   :  { %v1980_v52 = vadd.f32 %v1976_v9, %v1947_v56  ;;  %v1761_v26 = vadd.f32 %v1760_v8, %v1759_v36 }
 0x200   :  { %v1820_v25 = vpop.permute.xlu1 %1819  ;;  %v1979_v20 = vadd.f32 %v1975_v17, %v1946_v63 }
 0x201   :  { %v1791_v55 = vpop.permute.xlu0 %1790  ;;  %2396 = vlog2.f32 %v1980_v52  ;;  %v1825_v39 = vmul.f32 %v2389_v54, %v1820_v25  ;;  %v1762_v40 = vrot.slane %v1761_v26, 4 }
 0x202   :  { %2398 = vlog2.f32 %v1979_v20  ;;  %v1796_v50 = vmul.f32 %v2391_v31, %v1791_v55 }
 0x203   :  { %2400 = vlog2.f32 %v1859_v3  ;;  %v2395_v13 = vpop.eup %2394  ;;  %v1763_v41 = vadd.f32 %v1762_v40, %v1761_v26 }
 0x204   :  { %v1911_v47 = vpop.permute.xlu1 %1910  ;;  %v1829_v42 = vadd.f32 %v1825_v39, %v1796_v50  ;;  %v1866_v9 = vmul.f32 0.6931472, %v2395_v13 }
 0x205   :  { %v1848_v58 = vpop.permute.xlu0 %1847  ;;  %v1916_v2 = vmul.f32 %v2391_v31, %v1911_v47  ;;  %v1764_v48 = vrot.slane %v1763_v41, 2 }
 0x206   :  { %v1857_v5 = vmul.f32 %v2385_v49, %v1848_v58  ;;  %v1872_v63 = vsel %vm266_vm0, %v1866_v9, 0.0 }
 0x207   :  { %v1765_v12 = vadd.f32 %v1764_v48, %v1763_v41 }
 0x208   :  { %v1861_v10 = vadd.f32 %v1857_v5, %v1828_v53  ;;  %v1968_v27 = vpop.permute.xlu1 %1967 }
 0x209   :  { %v1977_v33 = vmul.f32 %v2385_v49, %v1968_v27  ;;  %v1940_v34 = vpop.permute.xlu0 %1939  ;;  %v1766_v32 = vrot.slane %v1765_v12, 1 }
 0x20a   :  { %2402 = vlog2.f32 %v1861_v10  ;;  %v1945_v0 = vmul.f32 %v2389_v54, %v1940_v34 }
 0x20b   :  { %v1981_v21 = vadd.f32 %v1977_v33, %v1948_v60  ;;  %v2397_v37 = vpop.eup %2396 }
 0x20c   :  { %v1973_v1 = vpop.permute.xlu1 %1972  ;;  %v1949_v38 = vadd.f32 %v1945_v0, %v1916_v2  ;;  %v2399_v14 = vpop.eup %2398  ;;  %v1986_v6 = vmul.f32 0.6931472, %v2397_v37  ;;  %v1767_v0 = vadd.f32 %v1766_v32, %v1765_v12  ;;  %v1886_v2 = vstv %s2212_s6 }
 0x20d   :  { %2404 = vlog2.f32 %v1981_v21  ;;  %v1978_v23 = vmul.f32 %v2393_v57, %v1973_v1  ;;  %v1853_v43 = vpop.permute.xlu0 %1852  ;;  %v2401_v24 = vpop.eup %2400  ;;  %v1984_v62 = vmul.f32 0.6931472, %v2399_v14 }
 0x20e   :  { %v1858_v35 = vmul.f32 %v2393_v57, %v1853_v43  ;;  %v1864_v30 = vmul.f32 0.6931472, %v2401_v24  ;;  %v1992_v56 = vsel %vm266_vm0, %v1986_v6, 0.0  ;;  %v2006_v57 = vstv %s2225_s30 }
 0x20f   :  { %v1982_v19 = vadd.f32 %v1978_v23, %v1949_v38  ;;  %v1991_v11 = vsel %vm266_vm0, %v1984_v62, 0.0 }
 0x210   :  { %v1862_v22 = vadd.f32 %v1858_v35, %v1829_v42  ;;  %v1871_v44 = vsel %vm266_vm0, %v1864_v30, 0.0  ;;  %v1993_v51 = vadd.f32 %v1992_v56, %v1991_v11 }
 0x211   :  { %2406 = vlog2.f32 %v1982_v19  ;;  %v1873_v20 = vadd.f32 %v1872_v63, %v1871_v44 }
 0x212   :  { %2408 = vlog2.f32 %v1862_v22 }
 0x214   :  { %v2403_v16 = vpop.eup %2402 }
 0x215   :  { %v1868_v17 = vmul.f32 0.6931472, %v2403_v16 }
 0x217   :  { %v2405_v4 = vpop.eup %2404  ;;  %v1874_v28 = vsel %vm266_vm0, %v1868_v17, 0.0 }
 0x218   :  { %v1988_v25 = vmul.f32 0.6931472, %v2405_v4  ;;  %v1875_v7 = vadd.f32 %v1874_v28, %v1873_v20 }
 0x21a   :  { %v1994_v59 = vsel %vm266_vm0, %v1988_v25, 0.0 }
 0x21b   :  { %v2407_v55 = vpop.eup %2406  ;;  %v1995_v3 = vadd.f32 %v1994_v59, %v1993_v51 }
 0x21c   :  { %v2409_v52 = vpop.eup %2408  ;;  %v1990_v49 = vmul.f32 0.6931472, %v2407_v55 }
 0x21d   :  { %v1870_v47 = vmul.f32 0.6931472, %v2409_v52 }
 0x21e   :  { %v1996_v46 = vsel %vm266_vm0, %v1990_v49, 0.0 }
 0x21f   :  { %v1997_v58 = vadd.f32 %v1996_v46, %v1995_v3  ;;  %v1876_v53 = vsel %vm266_vm0, %v1870_v47, 0.0 }
 0x220   :  { %v1877_v5 = vadd.f32 %v1876_v53, %v1875_v7 }
 0x221   :  { %v1998_v61 = vrot.slane %v1997_v58, 4 }
 0x222   :  { %v1878_v54 = vrot.slane %v1877_v5, 4 }
 0x223   :  { %v1999_v10 = vadd.f32 %v1998_v61, %v1997_v58 }
 0x224   :  { %v1879_v27 = vadd.f32 %v1878_v54, %v1877_v5 }
 0x225   :  { %v2000_v29 = vrot.slane %v1999_v10, 2 }
 0x226   :  { %v1880_v31 = vrot.slane %v1879_v27, 2 }
 0x227   :  { %v2001_v60 = vadd.f32 %v2000_v29, %v1999_v10 }
 0x228   :  { %v1881_v39 = vadd.f32 %v1880_v31, %v1879_v27 }
 0x229   :  { %v2002_v33 = vrot.slane %v2001_v60, 1 }
 0x22a   :  { %v1882_v34 = vrot.slane %v1881_v39, 1 }
 0x22b   :  { %v2003_v50 = vadd.f32 %v2002_v33, %v2001_v60 }
 0x22c   :  { %v1883_v15 = vadd.f32 %v1882_v34, %v1881_v39 }
 0x22d   :  { %v2004_v21 = vadd.f32 %v2003_v50, %v1767_v0 }
 0x22e   :  { %v1884_v45 = vadd.f32 %v1883_v15, %v1767_v0 }
 0x22f   :  { %v2007_v1 = vadd.f32 %v2006_v57, %v2004_v21 }
 0x230   :  { %v1887_v18 = vadd.f32 %v1886_v2, %v1884_v45 }
 0x232   :  { %v2008_v38 = vmax.f32 %v1887_v18, %v2007_v1 }
 0x234   :  { %v2009_v23 = vsub.f32 %v1887_v18, %v2008_v38  ;;  %v2012_v43 = vsub.f32 %v2007_v1, %v2008_v38 }
 0x236   :  { %v2010_v42 = vmul.f32 1.442695, %v2009_v23  ;;  %v2013_v35 = vmul.f32 1.442695, %v2012_v43 }
 0x238   :  { %2410 = vpow2.f32 %v2010_v42 }
 0x239   :  { %2412 = vpow2.f32 %v2013_v35 }
 0x242   :  { %v2411_v13 = vpop.eup %2410 }
 0x243   :  { %v2413_v36 = vpop.eup %2412 }
 0x244   :  { %v2015_v19 = vadd.f32 %v2413_v36, %v2411_v13 }
 0x246   :  { %2414 = vlog2.f32 %v2015_v19 }
 0x250   :  { %v2415_v37 = vpop.eup %2414 }
 0x251   :  { %v2017_v22 = vmul.f32 0.6931472, %v2415_v37 }
 0x253   :  { %v2018_v14 = vadd.f32 %v2017_v22, %v2008_v38 }
 0x255   :  { %v2226_v24 = vadd.f32 -29.406033, %v2018_v14 }
 0x257   :  { %2020 = vst.msk [vmem:[#allocation5 + $0x3] sm:$0x1] %vm531_vm1, %v2226_v24 }
 0x258   :  { %2443 = shalt.err (!%p2440_p9)
}
 0x259   :  { %s2444_s11 = scalar_lea.hbm %s3584_s5, 64 }
 0x25a   :  { %p2445_p10 = scmp.ne.s32.totalorder %s3584_s5, %s2444_s11  ;;  %p2448_p11 = scmp.lt.u32.totalorder %s2444_s11, %s3584_s5 }
 0x25c   :  { %p2450_p12 = pnand %p2448_p11, %p2445_p10 }
 0x25e   :  { %2453 = shalt.err (!%p2450_p12)
}
 0x25f   :  { %2030 = dma.vmem_to_hbm [thread:$0]  %s2028_s8, 64, %s3584_s5, [#allocation3]  }
 0x260   :  { %2456 = dma.done.wait [#allocation3], 64  }
 0x261   :  { %2457 = vsyncadd [#allocation3], 4294967232 }
 0x262   :  { %2034 = vsyncpa [#allocation3], 1 }
 0x263   :  { %2035 = vsyncpa [#allocation4], 1 }

</bundles_post_ra>
